<compile_context>
chip_gen: v7x
topology: tpu7x:2x2x1
jax: 0.10.0
libtpu: 0.0.40
codegen_flags: <defaults>
</compile_context>

<pallas_src>
import functools

import jax
import jax.numpy as jnp
from jax.experimental import pallas as pl
from jax.experimental.pallas import tpu as pltpu


# ------------------------------ Pallas kernel --------------------------------

def _res_block_bot_kernel(x_ref, s2a_ref, b2a_ref, wcat_ref, b2b1_ref,
                          w3_ref, b2b2_ref, wp_ref, *refs,
                          H, W, d, C4, C2, Cout, emit_t):
    """Whole ResBlock_bot for one image, fully fused in VMEM/registers."""
    pad_ref = refs[-1]                        # VMEM scratch (H+2d, W+2d, C4) f32
    if emit_t:
        t_ref, o_ref = refs[0], refs[1]
    else:
        o_ref = refs[0]

    # BN2a (eval mode, scale/bias pre-folded) + ReLU — f32 elementwise.
    t = jnp.maximum(x_ref[...] * s2a_ref[...] + b2a_ref[...], 0.0)    # (HW, Cin)
    if emit_t:
        t_ref[...] = t

    # One wide MXU dot against [w1 | w2a*scale(bn2b1)]; bf16 operands, f32 acc.
    y = jnp.dot(t.astype(jnp.bfloat16), wcat_ref[...],
                preferred_element_type=jnp.float32)                   # (HW, Cout+C4)
    br1 = y[:, :Cout]                                                 # branch1
    a = jnp.maximum(y[:, Cout:] + b2b1_ref[...], 0.0)                 # (HW, C4) f32
    # dropout_2b1 / dropout_2b2 have p=0.0 -> identity.

    # Zero-padded halo for the dilated 3x3 conv, built once in VMEM scratch.
    pad_ref[...] = jnp.zeros_like(pad_ref)
    pad_ref[d:d + H, d:d + W, :] = a.reshape(H, W, C4)

    # Dilated 3x3 conv as 9 shifted-tap matmuls (BN2b2 scale folded into w3).
    acc = jnp.zeros((H * W, C2), jnp.float32)
    for kh in range(3):
        for kw in range(3):
            tap = pad_ref[kh * d:kh * d + H, kw * d:kw * d + W, :]    # (H, W, C4)
            acc = acc + jnp.dot(tap.reshape(H * W, C4).astype(jnp.bfloat16),
                                w3_ref[kh, kw],
                                preferred_element_type=jnp.float32)

    b = jnp.maximum(acc + b2b2_ref[...], 0.0)                         # bias + ReLU
    o = jnp.dot(b.astype(jnp.bfloat16), wp_ref[...],
                preferred_element_type=jnp.float32)                   # final 1x1
    o_ref[...] = br1 + o                                              # residual add


# -------------------------------- wrapper -------------------------------------

def _fused_forward(x2d, prep, N, H, W, Cin, Cout, d, emit_t):
    C4, C2 = Cout // 4, Cout // 2
    HW = H * W
    assert HW % 8 == 0, "H*W must be a multiple of 8 for the (H*W, C) tiles"

    out_shapes, out_specs = [], []
    if emit_t:
        out_shapes.append(jax.ShapeDtypeStruct((N * HW, Cin), jnp.float32))
        out_specs.append(pl.BlockSpec((HW, Cin), lambda n: (n, 0)))
    out_shapes.append(jax.ShapeDtypeStruct((N * HW, Cout), jnp.float32))
    out_specs.append(pl.BlockSpec((HW, Cout), lambda n: (n, 0)))

    outs = pl.pallas_call(
        functools.partial(_res_block_bot_kernel, H=H, W=W, d=d,
                          C4=C4, C2=C2, Cout=Cout, emit_t=emit_t),
        out_shape=tuple(out_shapes),
        grid=(N,),
        in_specs=[pl.BlockSpec((HW, Cin), lambda n: (n, 0)),            # x tile
                  pl.BlockSpec((1, Cin), lambda n: (0, 0)),             # bn2a scale
                  pl.BlockSpec((1, Cin), lambda n: (0, 0)),             # bn2a bias
                  pl.BlockSpec((Cin, Cout + C4), lambda n: (0, 0)),     # [w1|w2a] resident
                  pl.BlockSpec((1, C4), lambda n: (0, 0)),              # bn2b1 bias
                  pl.BlockSpec((3, 3, C4, C2), lambda n: (0, 0, 0, 0)), # w2b1 resident
                  pl.BlockSpec((1, C2), lambda n: (0, 0)),              # bn2b2 bias
                  pl.BlockSpec((C2, Cout), lambda n: (0, 0))],          # w2b2 resident
        out_specs=tuple(out_specs),
        scratch_shapes=[pltpu.VMEM((H + 2 * d, W + 2 * d, C4), jnp.float32)],
        compiler_params=pltpu.CompilerParams(
            dimension_semantics=("parallel",),          # shards images across TCs on v7x
            vmem_limit_bytes=32 * 1024 * 1024),         # safe on v5e/v6e/v7x
    )(x2d, prep["s2a"], prep["b2a"], prep["w_cat"], prep["b2b1"],
      prep["w2b1"], prep["b2b2"], prep["w2b2"])

    if emit_t:
        t2d, out2d = outs
        return out2d, t2d
    (out2d,) = outs
    return out2d, None


# --------------------------- parameters / model --------------------------------

def bn_scale_bias(p, eps=1e-5):
    s = p["gamma"] / jnp.sqrt(p["var"] + eps)
    b = p["beta"] - p["mean"] * s
    return s.reshape(1, -1), b.reshape(1, -1)


def prepare_params(params, eps=1e-5):
    """Fold BN scales into the downstream conv weights; cast matmul weights to bf16."""
    s2a, b2a = bn_scale_bias(params["bn2a"], eps)
    s2b1, b2b1 = bn_scale_bias(params["bn2b1"], eps)
    s2b2, b2b2 = bn_scale_bias(params["bn2b2"], eps)
    w2a_folded = params["w2a"] * s2b1                                   # (Cin, C4)
    w_cat = jnp.concatenate([params["w1"], w2a_folded], axis=1).astype(jnp.bfloat16)
    w2b1_folded = (params["w2b1"] * s2b2.reshape(1, 1, 1, -1)).astype(jnp.bfloat16)
    return dict(s2a=s2a, b2a=b2a, b2b1=b2b1, b2b2=b2b2, w_cat=w_cat,
                w2b1=w2b1_folded, w2b2=params["w2b2"].astype(jnp.bfloat16))


def init_params(key, cin, cout):
    assert cout % 4 == 0
    c4, c2 = cout // 4, cout // 2
    keys = jax.random.split(key, 7)

    def bn(k, c):
        k1, k2, k3, k4 = jax.random.split(k, 4)
        return dict(
            gamma=jax.random.uniform(k1, (c,), jnp.float32, 0.5, 1.5),
            beta=jax.random.normal(k2, (c,), jnp.float32) * 0.1,
            mean=jax.random.normal(k3, (c,), jnp.float32) * 0.1,
            var=jax.random.uniform(k4, (c,), jnp.float32, 0.5, 1.5),
        )

    return dict(
        bn2a=bn(keys[0], cin),
        bn2b1=bn(keys[1], c4),
        bn2b2=bn(keys[2], c2),
        # 1x1 convs stored as (Cin, Cout) matrices (PyTorch OIHW transposed).
        w1=jax.random.normal(keys[3], (cin, cout), jnp.float32) * (cin ** -0.5),
        w2a=jax.random.normal(keys[4], (cin, c4), jnp.float32) * (cin ** -0.5),
        w2b2=jax.random.normal(keys[5], (c2, cout), jnp.float32) * (c2 ** -0.5),
        # 3x3 dilated conv stored HWIO.
        w2b1=jax.random.normal(keys[6], (3, 3, c4, c2), jnp.float32) * ((9 * c4) ** -0.5),
    )


def res_block_bot_forward_nhwc(x_nhwc, params, dilation=1, get_x_bn_relu=False):
    N, H, W, Cin = x_nhwc.shape
    Cout = params["w1"].shape[1]
    prep = prepare_params(params)
    d = int(dilation)
    M = N * H * W

    out2d, t2d = _fused_forward(x_nhwc.reshape(M, Cin).astype(jnp.float32),
                                prep, N, H, W, Cin, Cout, d, get_x_bn_relu)
    out = out2d.reshape(N, H, W, Cout)
    if get_x_bn_relu:
        return out, t2d.reshape(N, H, W, Cin)
    return out


@functools.partial(jax.jit, static_argnames=("dilation", "get_x_bn_relu"))
def res_block_bot_forward(x_nchw, params, dilation=1, get_x_bn_relu=False):
    """NCHW wrapper for parity with the PyTorch module.  Production code should
    use res_block_bot_forward_nhwc (channels-last) and skip both layout transposes."""
    x_nhwc = jnp.transpose(x_nchw, (0, 2, 3, 1)).astype(jnp.float32)
    res = res_block_bot_forward_nhwc(x_nhwc, params, dilation, get_x_bn_relu)
    if get_x_bn_relu:
        out, t = res
        return jnp.transpose(out, (0, 3, 1, 2)), jnp.transpose(t, (0, 3, 1, 2))
    return jnp.transpose(res, (0, 3, 1, 2))


# ----------------------------- pure-JAX references ------------------------------

def reference_forward_f32(x_nchw, params, dilation=1):
    """Faithful f32 eval-mode forward (standard BN-after-conv ordering)."""
    eps = 1e-5
    x = jnp.transpose(x_nchw, (0, 2, 3, 1)).astype(jnp.float32)

    def bn(y, p):
        s = p["gamma"] / jnp.sqrt(p["var"] + eps)
        return (y - p["mean"]) * s + p["beta"]

    t = jnp.maximum(bn(x, params["bn2a"]), 0.0)
    branch1 = jnp.einsum("nhwc,cd->nhwd", t, params["w1"])
    a = jnp.maximum(bn(jnp.einsum("nhwc,cd->nhwd", t, params["w2a"]),
                       params["bn2b1"]), 0.0)
    b = jax.lax.conv_general_dilated(
        a, params["w2b1"], window_strides=(1, 1),
        padding=[(dilation, dilation), (dilation, dilation)],
        rhs_dilation=(dilation, dilation),
        dimension_numbers=("NHWC", "HWIO", "NHWC"))
    b = jnp.maximum(bn(b, params["bn2b2"]), 0.0)
    y = jnp.einsum("nhwc,cd->nhwd", b, params["w2b2"])
    out = branch1 + y
    return jnp.transpose(out, (0, 3, 1, 2)), jnp.transpose(t, (0, 3, 1, 2))


def reference_forward_mirrored(x_nchw, params, dilation=1):
    """Same folded/bf16-operand math as the Pallas path, in plain XLA ops, so the
    only differences vs the kernel are accumulation order (tight check)."""
    prep = prepare_params(params)
    cout = params["w1"].shape[1]
    x = jnp.transpose(x_nchw, (0, 2, 3, 1)).astype(jnp.float32)
    t = jnp.maximum(x * prep["s2a"] + prep["b2a"], 0.0)
    t_bf = t.astype(jnp.bfloat16)
    w1_bf, w2a_bf = prep["w_cat"][:, :cout], prep["w_cat"][:, cout:]
    branch1 = jnp.einsum("nhwc,cd->nhwd", t_bf, w1_bf,
                         preferred_element_type=jnp.float32)
    a = jnp.maximum(jnp.einsum("nhwc,cd->nhwd", t_bf, w2a_bf,
                               preferred_element_type=jnp.float32)
                    + prep["b2b1"], 0.0)
    b = jax.lax.conv_general_dilated(
        a.astype(jnp.bfloat16), prep["w2b1"], window_strides=(1, 1),
        padding=[(dilation, dilation), (dilation, dilation)],
        rhs_dilation=(dilation, dilation),
        dimension_numbers=("NHWC", "HWIO", "NHWC"),
        preferred_element_type=jnp.float32)
    b = jnp.maximum(b + prep["b2b2"], 0.0)
    y = jnp.einsum("nhwc,cd->nhwd", b.astype(jnp.bfloat16), prep["w2b2"],
                   preferred_element_type=jnp.float32)
    return jnp.transpose(branch1 + y, (0, 3, 1, 2))


# ------------------------------------- main -------------------------------------

if __name__ == "__main__":
    key = jax.random.PRNGKey(0)
    kx, kp = jax.random.split(key)

    # in_channels != out_channels so conv_branch1 exists (the forward requires it).
    # Channel counts chosen lane-friendly (Cout = 128); spatial stays small.
    N, Cin, H, W = 2, 64, 16, 16
    Cout = 128

    x = jax.random.normal(kx, (N, Cin, H, W), jnp.float32)
    params = init_params(kp, Cin, Cout)

    for dil in (1, 2):
        out, x_bn_relu = res_block_bot_forward(x, params, dilation=dil,
                                               get_x_bn_relu=True)
        out = jax.block_until_ready(out)
        x_bn_relu = jax.block_until_ready(x_bn_relu)
        assert out.shape == (N, Cout, H, W)
        assert x_bn_relu.shape == (N, Cin, H, W)

        ref_f32, ref_t = reference_forward_f32(x, params, dilation=dil)
        ref_mirror = reference_forward_mirrored(x, params, dilation=dil)

        # x_bn_relu is pure f32 elementwise -> tight.
        assert jnp.allclose(x_bn_relu, ref_t, rtol=1e-4, atol=1e-4), \
            f"x_bn_relu mismatch (dilation={dil})"
        # Identical folded/bf16 math in plain XLA -> only accumulation-order diffs.
        assert jnp.allclose(out, ref_mirror, rtol=1e-2, atol=1e-2), \
            f"mismatch vs mirrored bf16 reference (dilation={dil})"
        # Full-f32 eval-mode PyTorch semantics -> only bf16 operand rounding.
        assert jnp.allclose(out, ref_f32, rtol=1e-1, atol=1e-1), \
            f"mismatch vs f32 reference (dilation={dil})"

    # Also exercise the get_x_bn_relu=False kernel specialization.
    out_only = jax.block_until_ready(res_block_bot_forward(x, params, dilation=1))
    ref_mirror = reference_forward_mirrored(x, params, dilation=1)
    assert jnp.allclose(out_only, ref_mirror, rtol=1e-2, atol=1e-2), \
        "mismatch (get_x_bn_relu=False path)"

    print("KERNEL_OK")
</pallas_src>

<mosaic_0001>
module attributes {stable_mosaic.version = 11 : i64} {
  func.func @_res_block_bot_kernel(%arg0: i32, %arg1: memref<256x64xf32, #tpu.memory_space<vmem>>, %arg2: memref<1x64xf32, #tpu.memory_space<vmem>>, %arg3: memref<1x64xf32, #tpu.memory_space<vmem>>, %arg4: memref<64x160xbf16, #tpu.memory_space<vmem>>, %arg5: memref<1x32xf32, #tpu.memory_space<vmem>>, %arg6: memref<3x3x32x64xbf16, #tpu.memory_space<vmem>>, %arg7: memref<1x64xf32, #tpu.memory_space<vmem>>, %arg8: memref<64x128xbf16, #tpu.memory_space<vmem>>, %arg9: memref<256x64xf32, #tpu.memory_space<vmem>>, %arg10: memref<256x128xf32, #tpu.memory_space<vmem>>, %arg11: memref<18x18x32xf32, #tpu.memory_space<vmem>>) attributes {dimension_semantics = [#tpu.dimension_semantics<parallel>], iteration_bounds = array<i64: 2>, scalar_prefetch = 0 : i64, scratch_operands = 1 : i64, tpu.core_type = #tpu.core_type<tc>, window_params = [{transform_indices = @transform_0, window_bounds = array<i64: 256, 64>}, {pipeline_mode = #tpu.pipeline_mode<synchronous>, transform_indices = @transform_1, window_bounds = array<i64: 1, 64>}, {pipeline_mode = #tpu.pipeline_mode<synchronous>, transform_indices = @transform_2, window_bounds = array<i64: 1, 64>}, {pipeline_mode = #tpu.pipeline_mode<synchronous>, transform_indices = @transform_3, window_bounds = array<i64: 64, 160>}, {pipeline_mode = #tpu.pipeline_mode<synchronous>, transform_indices = @transform_4, window_bounds = array<i64: 1, 32>}, {pipeline_mode = #tpu.pipeline_mode<synchronous>, transform_indices = @transform_5, window_bounds = array<i64: 3, 3, 32, 64>}, {pipeline_mode = #tpu.pipeline_mode<synchronous>, transform_indices = @transform_6, window_bounds = array<i64: 1, 64>}, {pipeline_mode = #tpu.pipeline_mode<synchronous>, transform_indices = @transform_7, window_bounds = array<i64: 64, 128>}, {transform_indices = @transform_8, window_bounds = array<i64: 256, 64>}, {transform_indices = @transform_9, window_bounds = array<i64: 256, 128>}]} {
    %c0 = arith.constant 0 : index
    %c0_0 = arith.constant 0 : index
    %0 = vector.load %arg1[%c0, %c0_0] : memref<256x64xf32, #tpu.memory_space<vmem>>, vector<256x64xf32>
    %c0_1 = arith.constant 0 : index
    %c0_2 = arith.constant 0 : index
    %1 = vector.load %arg2[%c0_1, %c0_2] : memref<1x64xf32, #tpu.memory_space<vmem>>, vector<1x64xf32>
    %2 = vector.broadcast %1 : vector<1x64xf32> to vector<256x64xf32>
    %3 = arith.mulf %0, %2 : vector<256x64xf32>
    %c0_3 = arith.constant 0 : index
    %c0_4 = arith.constant 0 : index
    %4 = vector.load %arg3[%c0_3, %c0_4] : memref<1x64xf32, #tpu.memory_space<vmem>>, vector<1x64xf32>
    %5 = vector.broadcast %4 : vector<1x64xf32> to vector<256x64xf32>
    %6 = arith.addf %3, %5 : vector<256x64xf32>
    %cst = arith.constant 0.000000e+00 : f32
    %7 = vector.broadcast %cst : f32 to vector<256x64xf32>
    %8 = arith.maximumf %6, %7 : vector<256x64xf32>
    %c0_5 = arith.constant 0 : index
    %c0_6 = arith.constant 0 : index
    %9 = vector.load %arg9[%c0_5, %c0_6] : memref<256x64xf32, #tpu.memory_space<vmem>>, vector<256x64xf32>
    tpu.vector_store %arg9[%c0_5, %c0_6], %8 {strides = array<i32>} : memref<256x64xf32, #tpu.memory_space<vmem>>, vector<256x64xf32>,
    %10 = arith.truncf %8 : vector<256x64xf32> to vector<256x64xbf16>
    %c0_7 = arith.constant 0 : index
    %c0_8 = arith.constant 0 : index
    %11 = vector.load %arg4[%c0_7, %c0_8] : memref<64x160xbf16, #tpu.memory_space<vmem>>, vector<64x160xbf16>
    %cst_9 = arith.constant dense<0.000000e+00> : vector<256x160xf32>
    %12 = tpu.matmul %10, %11, %cst_9 {dimension_numbers = #tpu.dot_dimension_numbers<[1], [0], [0], [1], [0, 0, 1, 1], [], []>} : vector<256x64xbf16>, vector<64x160xbf16>, vector<256x160xf32> -> vector<256x160xf32>
    %13 = vector.extract_strided_slice %12 {offsets = [0, 0], sizes = [256, 128], strides = [1, 1]} : vector<256x160xf32> to vector<256x128xf32>
    %14 = vector.extract_strided_slice %12 {offsets = [0, 128], sizes = [256, 32], strides = [1, 1]} : vector<256x160xf32> to vector<256x32xf32>
    %c0_10 = arith.constant 0 : index
    %c0_11 = arith.constant 0 : index
    %15 = vector.load %arg5[%c0_10, %c0_11] : memref<1x32xf32, #tpu.memory_space<vmem>>, vector<1x32xf32>
    %16 = vector.broadcast %15 : vector<1x32xf32> to vector<256x32xf32>
    %17 = arith.addf %14, %16 : vector<256x32xf32>
    %cst_12 = arith.constant 0.000000e+00 : f32
    %18 = vector.broadcast %cst_12 : f32 to vector<256x32xf32>
    %19 = arith.maximumf %17, %18 : vector<256x32xf32>
    %cst_13 = arith.constant 0.000000e+00 : f32
    %20 = vector.broadcast %cst_13 : f32 to vector<18x18x32xf32>
    %c0_14 = arith.constant 0 : index
    %c0_15 = arith.constant 0 : index
    %c0_16 = arith.constant 0 : index
    %21 = vector.load %arg11[%c0_14, %c0_15, %c0_16] : memref<18x18x32xf32, #tpu.memory_space<vmem>>, vector<18x18x32xf32>
    tpu.vector_store %arg11[%c0_14, %c0_15, %c0_16], %20 {strides = array<i32>} : memref<18x18x32xf32, #tpu.memory_space<vmem>>, vector<18x18x32xf32>,
    %22 = vector.shape_cast %19 : vector<256x32xf32> to vector<16x16x32xf32>
    %c1 = arith.constant 1 : index
    %c1_17 = arith.constant 1 : index
    %c0_18 = arith.constant 0 : index
    %23 = vector.load %arg11[%c1, %c1_17, %c0_18] : memref<18x18x32xf32, #tpu.memory_space<vmem>>, vector<16x16x32xf32>
    tpu.vector_store %arg11[%c1, %c1_17, %c0_18], %22 {strides = array<i32>} : memref<18x18x32xf32, #tpu.memory_space<vmem>>, vector<16x16x32xf32>,
    %cst_19 = arith.constant 0.000000e+00 : f32
    %24 = vector.broadcast %cst_19 : f32 to vector<256x64xf32>
    %c0_20 = arith.constant 0 : index
    %c0_21 = arith.constant 0 : index
    %c0_22 = arith.constant 0 : index
    %25 = vector.load %arg11[%c0_20, %c0_21, %c0_22] : memref<18x18x32xf32, #tpu.memory_space<vmem>>, vector<16x16x32xf32>
    %26 = vector.shape_cast %25 : vector<16x16x32xf32> to vector<256x32xf32>
    %27 = arith.truncf %26 : vector<256x32xf32> to vector<256x32xbf16>
    %c0_23 = arith.constant 0 : index
    %c0_24 = arith.constant 0 : index
    %c0_25 = arith.constant 0 : index
    %c0_26 = arith.constant 0 : index
    %28 = vector.load %arg6[%c0_23, %c0_24, %c0_25, %c0_26] : memref<3x3x32x64xbf16, #tpu.memory_space<vmem>>, vector<1x1x32x64xbf16>
    %29 = vector.shape_cast %28 : vector<1x1x32x64xbf16> to vector<32x64xbf16>
    %cst_27 = arith.constant dense<0.000000e+00> : vector<256x64xf32>
    %30 = tpu.matmul %27, %29, %cst_27 {dimension_numbers = #tpu.dot_dimension_numbers<[1], [0], [0], [1], [0, 0, 1, 1], [], []>} : vector<256x32xbf16>, vector<32x64xbf16>, vector<256x64xf32> -> vector<256x64xf32>
    %31 = arith.addf %24, %30 : vector<256x64xf32>
    %c0_28 = arith.constant 0 : index
    %c1_29 = arith.constant 1 : index
    %c0_30 = arith.constant 0 : index
    %32 = vector.load %arg11[%c0_28, %c1_29, %c0_30] : memref<18x18x32xf32, #tpu.memory_space<vmem>>, vector<16x16x32xf32>
    %33 = vector.shape_cast %32 : vector<16x16x32xf32> to vector<256x32xf32>
    %34 = arith.truncf %33 : vector<256x32xf32> to vector<256x32xbf16>
    %c0_31 = arith.constant 0 : index
    %c1_32 = arith.constant 1 : index
    %c0_33 = arith.constant 0 : index
    %c0_34 = arith.constant 0 : index
    %35 = vector.load %arg6[%c0_31, %c1_32, %c0_33, %c0_34] : memref<3x3x32x64xbf16, #tpu.memory_space<vmem>>, vector<1x1x32x64xbf16>
    %36 = vector.shape_cast %35 : vector<1x1x32x64xbf16> to vector<32x64xbf16>
    %cst_35 = arith.constant dense<0.000000e+00> : vector<256x64xf32>
    %37 = tpu.matmul %34, %36, %cst_35 {dimension_numbers = #tpu.dot_dimension_numbers<[1], [0], [0], [1], [0, 0, 1, 1], [], []>} : vector<256x32xbf16>, vector<32x64xbf16>, vector<256x64xf32> -> vector<256x64xf32>
    %38 = arith.addf %31, %37 : vector<256x64xf32>
    %c0_36 = arith.constant 0 : index
    %c2 = arith.constant 2 : index
    %c0_37 = arith.constant 0 : index
    %39 = vector.load %arg11[%c0_36, %c2, %c0_37] : memref<18x18x32xf32, #tpu.memory_space<vmem>>, vector<16x16x32xf32>
    %40 = vector.shape_cast %39 : vector<16x16x32xf32> to vector<256x32xf32>
    %41 = arith.truncf %40 : vector<256x32xf32> to vector<256x32xbf16>
    %c0_38 = arith.constant 0 : index
    %c2_39 = arith.constant 2 : index
    %c0_40 = arith.constant 0 : index
    %c0_41 = arith.constant 0 : index
    %42 = vector.load %arg6[%c0_38, %c2_39, %c0_40, %c0_41] : memref<3x3x32x64xbf16, #tpu.memory_space<vmem>>, vector<1x1x32x64xbf16>
    %43 = vector.shape_cast %42 : vector<1x1x32x64xbf16> to vector<32x64xbf16>
    %cst_42 = arith.constant dense<0.000000e+00> : vector<256x64xf32>
    %44 = tpu.matmul %41, %43, %cst_42 {dimension_numbers = #tpu.dot_dimension_numbers<[1], [0], [0], [1], [0, 0, 1, 1], [], []>} : vector<256x32xbf16>, vector<32x64xbf16>, vector<256x64xf32> -> vector<256x64xf32>
    %45 = arith.addf %38, %44 : vector<256x64xf32>
    %c1_43 = arith.constant 1 : index
    %c0_44 = arith.constant 0 : index
    %c0_45 = arith.constant 0 : index
    %46 = vector.load %arg11[%c1_43, %c0_44, %c0_45] : memref<18x18x32xf32, #tpu.memory_space<vmem>>, vector<16x16x32xf32>
    %47 = vector.shape_cast %46 : vector<16x16x32xf32> to vector<256x32xf32>
    %48 = arith.truncf %47 : vector<256x32xf32> to vector<256x32xbf16>
    %c1_46 = arith.constant 1 : index
    %c0_47 = arith.constant 0 : index
    %c0_48 = arith.constant 0 : index
    %c0_49 = arith.constant 0 : index
    %49 = vector.load %arg6[%c1_46, %c0_47, %c0_48, %c0_49] : memref<3x3x32x64xbf16, #tpu.memory_space<vmem>>, vector<1x1x32x64xbf16>
    %50 = vector.shape_cast %49 : vector<1x1x32x64xbf16> to vector<32x64xbf16>
    %cst_50 = arith.constant dense<0.000000e+00> : vector<256x64xf32>
    %51 = tpu.matmul %48, %50, %cst_50 {dimension_numbers = #tpu.dot_dimension_numbers<[1], [0], [0], [1], [0, 0, 1, 1], [], []>} : vector<256x32xbf16>, vector<32x64xbf16>, vector<256x64xf32> -> vector<256x64xf32>
    %52 = arith.addf %45, %51 : vector<256x64xf32>
    %c1_51 = arith.constant 1 : index
    %c1_52 = arith.constant 1 : index
    %c0_53 = arith.constant 0 : index
    %53 = vector.load %arg11[%c1_51, %c1_52, %c0_53] : memref<18x18x32xf32, #tpu.memory_space<vmem>>, vector<16x16x32xf32>
    %54 = vector.shape_cast %53 : vector<16x16x32xf32> to vector<256x32xf32>
    %55 = arith.truncf %54 : vector<256x32xf32> to vector<256x32xbf16>
    %c1_54 = arith.constant 1 : index
    %c1_55 = arith.constant 1 : index
    %c0_56 = arith.constant 0 : index
    %c0_57 = arith.constant 0 : index
    %56 = vector.load %arg6[%c1_54, %c1_55, %c0_56, %c0_57] : memref<3x3x32x64xbf16, #tpu.memory_space<vmem>>, vector<1x1x32x64xbf16>
    %57 = vector.shape_cast %56 : vector<1x1x32x64xbf16> to vector<32x64xbf16>
    %cst_58 = arith.constant dense<0.000000e+00> : vector<256x64xf32>
    %58 = tpu.matmul %55, %57, %cst_58 {dimension_numbers = #tpu.dot_dimension_numbers<[1], [0], [0], [1], [0, 0, 1, 1], [], []>} : vector<256x32xbf16>, vector<32x64xbf16>, vector<256x64xf32> -> vector<256x64xf32>
    %59 = arith.addf %52, %58 : vector<256x64xf32>
    %c1_59 = arith.constant 1 : index
    %c2_60 = arith.constant 2 : index
    %c0_61 = arith.constant 0 : index
    %60 = vector.load %arg11[%c1_59, %c2_60, %c0_61] : memref<18x18x32xf32, #tpu.memory_space<vmem>>, vector<16x16x32xf32>
    %61 = vector.shape_cast %60 : vector<16x16x32xf32> to vector<256x32xf32>
    %62 = arith.truncf %61 : vector<256x32xf32> to vector<256x32xbf16>
    %c1_62 = arith.constant 1 : index
    %c2_63 = arith.constant 2 : index
    %c0_64 = arith.constant 0 : index
    %c0_65 = arith.constant 0 : index
    %63 = vector.load %arg6[%c1_62, %c2_63, %c0_64, %c0_65] : memref<3x3x32x64xbf16, #tpu.memory_space<vmem>>, vector<1x1x32x64xbf16>
    %64 = vector.shape_cast %63 : vector<1x1x32x64xbf16> to vector<32x64xbf16>
    %cst_66 = arith.constant dense<0.000000e+00> : vector<256x64xf32>
    %65 = tpu.matmul %62, %64, %cst_66 {dimension_numbers = #tpu.dot_dimension_numbers<[1], [0], [0], [1], [0, 0, 1, 1], [], []>} : vector<256x32xbf16>, vector<32x64xbf16>, vector<256x64xf32> -> vector<256x64xf32>
    %66 = arith.addf %59, %65 : vector<256x64xf32>
    %c2_67 = arith.constant 2 : index
    %c0_68 = arith.constant 0 : index
    %c0_69 = arith.constant 0 : index
    %67 = vector.load %arg11[%c2_67, %c0_68, %c0_69] : memref<18x18x32xf32, #tpu.memory_space<vmem>>, vector<16x16x32xf32>
    %68 = vector.shape_cast %67 : vector<16x16x32xf32> to vector<256x32xf32>
    %69 = arith.truncf %68 : vector<256x32xf32> to vector<256x32xbf16>
    %c2_70 = arith.constant 2 : index
    %c0_71 = arith.constant 0 : index
    %c0_72 = arith.constant 0 : index
    %c0_73 = arith.constant 0 : index
    %70 = vector.load %arg6[%c2_70, %c0_71, %c0_72, %c0_73] : memref<3x3x32x64xbf16, #tpu.memory_space<vmem>>, vector<1x1x32x64xbf16>
    %71 = vector.shape_cast %70 : vector<1x1x32x64xbf16> to vector<32x64xbf16>
    %cst_74 = arith.constant dense<0.000000e+00> : vector<256x64xf32>
    %72 = tpu.matmul %69, %71, %cst_74 {dimension_numbers = #tpu.dot_dimension_numbers<[1], [0], [0], [1], [0, 0, 1, 1], [], []>} : vector<256x32xbf16>, vector<32x64xbf16>, vector<256x64xf32> -> vector<256x64xf32>
    %73 = arith.addf %66, %72 : vector<256x64xf32>
    %c2_75 = arith.constant 2 : index
    %c1_76 = arith.constant 1 : index
    %c0_77 = arith.constant 0 : index
    %74 = vector.load %arg11[%c2_75, %c1_76, %c0_77] : memref<18x18x32xf32, #tpu.memory_space<vmem>>, vector<16x16x32xf32>
    %75 = vector.shape_cast %74 : vector<16x16x32xf32> to vector<256x32xf32>
    %76 = arith.truncf %75 : vector<256x32xf32> to vector<256x32xbf16>
    %c2_78 = arith.constant 2 : index
    %c1_79 = arith.constant 1 : index
    %c0_80 = arith.constant 0 : index
    %c0_81 = arith.constant 0 : index
    %77 = vector.load %arg6[%c2_78, %c1_79, %c0_80, %c0_81] : memref<3x3x32x64xbf16, #tpu.memory_space<vmem>>, vector<1x1x32x64xbf16>
    %78 = vector.shape_cast %77 : vector<1x1x32x64xbf16> to vector<32x64xbf16>
    %cst_82 = arith.constant dense<0.000000e+00> : vector<256x64xf32>
    %79 = tpu.matmul %76, %78, %cst_82 {dimension_numbers = #tpu.dot_dimension_numbers<[1], [0], [0], [1], [0, 0, 1, 1], [], []>} : vector<256x32xbf16>, vector<32x64xbf16>, vector<256x64xf32> -> vector<256x64xf32>
    %80 = arith.addf %73, %79 : vector<256x64xf32>
    %c2_83 = arith.constant 2 : index
    %c2_84 = arith.constant 2 : index
    %c0_85 = arith.constant 0 : index
    %81 = vector.load %arg11[%c2_83, %c2_84, %c0_85] : memref<18x18x32xf32, #tpu.memory_space<vmem>>, vector<16x16x32xf32>
    %82 = vector.shape_cast %81 : vector<16x16x32xf32> to vector<256x32xf32>
    %83 = arith.truncf %82 : vector<256x32xf32> to vector<256x32xbf16>
    %c2_86 = arith.constant 2 : index
    %c2_87 = arith.constant 2 : index
    %c0_88 = arith.constant 0 : index
    %c0_89 = arith.constant 0 : index
    %84 = vector.load %arg6[%c2_86, %c2_87, %c0_88, %c0_89] : memref<3x3x32x64xbf16, #tpu.memory_space<vmem>>, vector<1x1x32x64xbf16>
    %85 = vector.shape_cast %84 : vector<1x1x32x64xbf16> to vector<32x64xbf16>
    %cst_90 = arith.constant dense<0.000000e+00> : vector<256x64xf32>
    %86 = tpu.matmul %83, %85, %cst_90 {dimension_numbers = #tpu.dot_dimension_numbers<[1], [0], [0], [1], [0, 0, 1, 1], [], []>} : vector<256x32xbf16>, vector<32x64xbf16>, vector<256x64xf32> -> vector<256x64xf32>
    %87 = arith.addf %80, %86 : vector<256x64xf32>
    %c0_91 = arith.constant 0 : index
    %c0_92 = arith.constant 0 : index
    %88 = vector.load %arg7[%c0_91, %c0_92] : memref<1x64xf32, #tpu.memory_space<vmem>>, vector<1x64xf32>
    %89 = vector.broadcast %88 : vector<1x64xf32> to vector<256x64xf32>
    %90 = arith.addf %87, %89 : vector<256x64xf32>
    %cst_93 = arith.constant 0.000000e+00 : f32
    %91 = vector.broadcast %cst_93 : f32 to vector<256x64xf32>
    %92 = arith.maximumf %90, %91 : vector<256x64xf32>
    %93 = arith.truncf %92 : vector<256x64xf32> to vector<256x64xbf16>
    %c0_94 = arith.constant 0 : index
    %c0_95 = arith.constant 0 : index
    %94 = vector.load %arg8[%c0_94, %c0_95] : memref<64x128xbf16, #tpu.memory_space<vmem>>, vector<64x128xbf16>
    %cst_96 = arith.constant dense<0.000000e+00> : vector<256x128xf32>
    %95 = tpu.matmul %93, %94, %cst_96 {dimension_numbers = #tpu.dot_dimension_numbers<[1], [0], [0], [1], [0, 0, 1, 1], [], []>} : vector<256x64xbf16>, vector<64x128xbf16>, vector<256x128xf32> -> vector<256x128xf32>
    %96 = arith.addf %13, %95 : vector<256x128xf32>
    %c0_97 = arith.constant 0 : index
    %c0_98 = arith.constant 0 : index
    %97 = vector.load %arg10[%c0_97, %c0_98] : memref<256x128xf32, #tpu.memory_space<vmem>>, vector<256x128xf32>
    tpu.vector_store %arg10[%c0_97, %c0_98], %96 {strides = array<i32>} : memref<256x128xf32, #tpu.memory_space<vmem>>, vector<256x128xf32>,
    return
  }
  func.func @transform_0(%arg0: i32) -> (i32, i32) {
    %c0_i32 = arith.constant 0 : i32
    %c0_i32_0 = arith.constant 0 : i32
    return %arg0, %c0_i32 : i32, i32
  }
  func.func @transform_1(%arg0: i32) -> (i32, i32) {
    %c0_i32 = arith.constant 0 : i32
    %c0_i32_0 = arith.constant 0 : i32
    %c0_i32_1 = arith.constant 0 : i32
    return %c0_i32, %c0_i32_0 : i32, i32
  }
  func.func @transform_2(%arg0: i32) -> (i32, i32) {
    %c0_i32 = arith.constant 0 : i32
    %c0_i32_0 = arith.constant 0 : i32
    %c0_i32_1 = arith.constant 0 : i32
    return %c0_i32, %c0_i32_0 : i32, i32
  }
  func.func @transform_3(%arg0: i32) -> (i32, i32) {
    %c0_i32 = arith.constant 0 : i32
    %c0_i32_0 = arith.constant 0 : i32
    %c0_i32_1 = arith.constant 0 : i32
    return %c0_i32, %c0_i32_0 : i32, i32
  }
  func.func @transform_4(%arg0: i32) -> (i32, i32) {
    %c0_i32 = arith.constant 0 : i32
    %c0_i32_0 = arith.constant 0 : i32
    %c0_i32_1 = arith.constant 0 : i32
    return %c0_i32, %c0_i32_0 : i32, i32
  }
  func.func @transform_5(%arg0: i32) -> (i32, i32, i32, i32) {
    %c0_i32 = arith.constant 0 : i32
    %c0_i32_0 = arith.constant 0 : i32
    %c0_i32_1 = arith.constant 0 : i32
    %c0_i32_2 = arith.constant 0 : i32
    %c0_i32_3 = arith.constant 0 : i32
    return %c0_i32, %c0_i32_0, %c0_i32_1, %c0_i32_2 : i32, i32, i32, i32
  }
  func.func @transform_6(%arg0: i32) -> (i32, i32) {
    %c0_i32 = arith.constant 0 : i32
    %c0_i32_0 = arith.constant 0 : i32
    %c0_i32_1 = arith.constant 0 : i32
    return %c0_i32, %c0_i32_0 : i32, i32
  }
  func.func @transform_7(%arg0: i32) -> (i32, i32) {
    %c0_i32 = arith.constant 0 : i32
    %c0_i32_0 = arith.constant 0 : i32
    %c0_i32_1 = arith.constant 0 : i32
    return %c0_i32, %c0_i32_0 : i32, i32
  }
  func.func @transform_8(%arg0: i32) -> (i32, i32) {
    %c0_i32 = arith.constant 0 : i32
    %c0_i32_0 = arith.constant 0 : i32
    return %arg0, %c0_i32 : i32, i32
  }
  func.func @transform_9(%arg0: i32) -> (i32, i32) {
    %c0_i32 = arith.constant 0 : i32
    %c0_i32_0 = arith.constant 0 : i32
    return %arg0, %c0_i32 : i32, i32
  }
}

</mosaic_0001>

<bundles_post_ra>
// kernel: res_block_bot_forward.1
= control target key start
LH: loop header
LB: loop body
LE: loop exit
PB: predicated region body
PF: predicated region fallthrough
CT: control target
= control target key end

     0   :  { %15 = vsyncpa [#allocation4], 0  ;;  %s6825_s0 = inlined_call_operand.vmem [shape: f32[512,64], index: 0, kind: input, shape index: {}]   ;;  %s6826_s1 = inlined_call_operand.vmem [shape: f32[1,64], index: 1, kind: input, shape index: {}]   ;;  %s6827_s2 = inlined_call_operand.vmem [shape: f32[1,64], index: 2, kind: input, shape index: {}]   ;;  %s6828_s3 = inlined_call_operand.vmem [shape: bf16[64,160], index: 3, kind: input, shape index: {}]   ;;  %s6829_s4 = inlined_call_operand.vmem [shape: f32[1,32], index: 4, kind: input, shape index: {}]   ;;  %s6830_s5 = inlined_call_operand.vmem [shape: bf16[3,3,32,64], index: 5, kind: input, shape index: {}]   ;;  %s6831_s6 = inlined_call_operand.vmem [shape: f32[1,64], index: 6, kind: input, shape index: {}]   ;;  %s6832_s7 = inlined_call_operand.vmem [shape: bf16[64,128], index: 7, kind: input, shape index: {}]   ;;  %s6833_s8 = inlined_call_operand.hbm [shape: f32[512,64], index: 8, kind: output, shape index: {0}]   ;;  %s6834_s9 = inlined_call_operand.hbm [shape: f32[512,128], index: 9, kind: output, shape index: {1}]  }
   0x1   :  { %17 = vsyncpa [#allocation4 + $0x1], 0 }
   0x2   :  { %18 = vsyncpa [#allocation6], 0 }
   0x3   :  { %20 = vsyncpa [#allocation6 + $0x1], 0  ;;  %s5494_s30 = smov 0   ;;  %s5496_s10 = smov 0  }
   0x4   :  { %s5498_s11 = smov 0   ;;  %s5500_s12 = smov 0  }
   0x5 LB: > { %s5515_s13 = sadd.s32 4294967295, %s5436_s12   ;;  %s4198_s14 = sadd.s32 4294967294, %s5436_s12   ;;  %s5436_s12 = sphi %s5500_s12, %s6884_s12   ;;  %s5432_s11 = sphi %s5498_s11, %s6883_s11   ;;  %s5428_s10 = sphi %s5496_s10, %s6882_s10   ;;  %s5424_s30 = sphi %s5494_s30, %s6881_s30  }
   0x6   : > { %s5519_s15 = sadd.s32 1, %s5436_s12   ;;  %s206_s16 = sadd.s32 1, %s5432_s11 }
   0x7   : > { %s203_s17 = ssub.s32 %s5436_s12, %s5519_s15  ;;  %p216_p0 = scmp.ne.s32.totalorder %s5432_s11, %s5428_s10 }
   0x8   : > { %p204_p1 = scmp.eq.s32.totalorder %s203_s17, 0  ;;  %p217_p2 = scmp.eq.s32.totalorder %s5515_s13, 1 }
   0x9   : > { %p222_p3 = scmp.ne.s32.totalorder %s5428_s10, %s5424_s30  ;;  %p223_p4 = scmp.eq.s32.totalorder %s4198_s14, 1 }
   0xa   : > { %s5530_s18 = scalar_select %p204_p1, %s5432_s11, %s206_s16  }
   0xb   : > { %p5532_p5 = por %p217_p2, %p216_p0  ;;  %p5536_p6 = por %p223_p4, %p222_p3 }
   0xc   : > { %p4201_p7 = scmp.ge.s32.totalorder %s5436_s12, 1  ;;  %p297_p8 = scmp.lt.s32.totalorder %s5436_s12, 3 }
   0xe   : > { %p298_p9 = pnand %p4201_p7, %p297_p8 }
  0x10   : > { %301 = sbr.rel (%p298_p9) target bundleno = 1165 (0x48d), region = 52 }
  0x17   : > { %v5308_v0 = vld [vmem:[%s6828_s3 + $0x4] ss:$8 sps:$4 sm:$0xff]   ;;  %v5310_v1 = vld [vmem:[%s6828_s3] ss:$8 sps:$4 sm:$0xff]   ;;  %v5438_v2 = vmov 0   ;;  %s4204_s25 = sshll.u32 %s5515_s13, 5 }
  0x18   : > { %666 = vmatprep.mubr.bf16.mxu0 %v5438_v2  ;;  %634 = vmatprep.subr.bf16.mxu0 %v5308_v0  ;;  %v5311_v3 = vld [vmem:[%s6828_s3 + $0x14] ss:$8 sps:$4 sm:$0xff]   ;;  %v5313_v4 = vld [vmem:[%s6828_s3 + $0x10] ss:$8 sps:$4 sm:$0xff]   ;;  %p339_p10 = scmp.lt.s32.totalorder %s4204_s25, 63  ;;  %s5581_s21 = sand.u32 1, %s5428_s10  }
  0x19   : > { %635 = vmatpush1.bf16.msra.mxu0 %v5310_v1  ;;  %v5314_v5 = vld [vmem:[%s6828_s3 + $0x24] ss:$8 sps:$4 sm:$0xff]   ;;  %v5316_v6 = vld [vmem:[%s6828_s3 + $0x20] ss:$8 sps:$4 sm:$0xff]   ;;  %v5317_v7 = vld [vmem:[%s6828_s3 + $0x34] ss:$8 sps:$4 sm:$0xff]  }
  0x1a   : > { %636 = vmatprep.subr.bf16.mxu0 %v5311_v3  ;;  %s6886_s25 = smov (!%p339_p10, %s4204_s25), 63  ;;  %v5568_v8 = vld [vmem:[%s6826_s1] ss:$0 sm:$0xff]  ;;  %v5319_v19 = vld [vmem:[%s6828_s3 + $0x30] ss:$8 sps:$4 sm:$0xff]   ;;  %vm489_vm0 = vcmask 523264  }
  0x1b   : > { %s4205_s27 = sshll.u32 %s6886_s25, 3  ;;  %v5573_v9 = vld [vmem:[%s6827_s2] ss:$0 sm:$0xff]  ;;  %s6835_s23 = sshll.u32 %s5581_s21, 8  ;;  %vm898_vm1 = vcmask 261120   ;;  %vm901_vm2 = vcmask 254976  }
  0x1c   : > { %s5578_s17 = scalar_lea.vmem %s6825_s0, %s4205_s27  ;;  %s5628_s24 = scalar_lea.vmem [#allocation3], %s6835_s23 }
  0x1d   : > { %637 = vmatpush1.bf16.msra.mxu0 %v5313_v4  ;;  %v347_v10 = vld [vmem:[%s5578_s17] sm:$0xff]  ;;  %v348_v11 = vld [vmem:[%s5578_s17 + $0x8] sm:$0xff]  ;;  %v349_v12 = vld [vmem:[%s5578_s17 + $0x10] sm:$0xff]  ;;  %s6836_s29 = sshll.u32 %s5515_s13, 12  ;;  %s4088_s25 = sshll.u32 %s5628_s24, 4  ;;  %s6674_s25 = int_to_ptr.vmem [resolvable:$true] %s4088_s25 }
  0x1e   : > { %638 = vmatprep.subr.bf16.mxu0 %v5314_v5  ;;  %v386_v13 = vmul.f32 %v5568_v8, %v347_v10  ;;  %v387_v14 = vmul.f32 %v5568_v8, %v348_v11  ;;  %v350_v15 = vld [vmem:[%s5578_s17 + $0x18] sm:$0xff]  ;;  %v388_v16 = vmul.f32 %v5568_v8, %v349_v12  ;;  %v351_v17 = vld [vmem:[%s5578_s17 + $0x20] sm:$0xff]  ;;  %v352_v18 = vld [vmem:[%s5578_s17 + $0x28] sm:$0xff]  ;;  %s4070_s22 = scalar_lea.sflag [#allocation4], %s5581_s21  ;;  %s5342_s26 = scalar_lea.vmem %s6674_s25, 4096 }
  0x1f   : > { %v389_v20 = vmul.f32 %v5568_v8, %v350_v15  ;;  %v390_v21 = vmul.f32 %v5568_v8, %v351_v17  ;;  %v391_v22 = vmul.f32 %v5568_v8, %v352_v18  ;;  %v353_v23 = vld [vmem:[%s5578_s17 + $0x30] sm:$0xff]  ;;  %v354_v24 = vld [vmem:[%s5578_s17 + $0x38] sm:$0xff]  ;;  %v355_v33 = vld [vmem:[%s5578_s17 + $0x40] sm:$0xff]  ;;  %p5343_p11 = scmp.ne.s32.totalorder %s6674_s25, %s5342_s26  ;;  %s5440_s27 = smov [#allocation3]  }
  0x20   : > { %v425_v25 = vadd.f32 %v5573_v9, %v386_v13  ;;  %v426_v26 = vadd.f32 %v5573_v9, %v387_v14  ;;  %v427_v27 = vadd.f32 %v5573_v9, %v388_v16  ;;  %v392_v28 = vmul.f32 %v5568_v8, %v353_v23  ;;  %v356_v34 = vld [vmem:[%s5578_s17 + $0x48] sm:$0xff]  ;;  %v357_v39 = vld [vmem:[%s5578_s17 + $0x50] sm:$0xff]  ;;  %v358_v44 = vld [vmem:[%s5578_s17 + $0x58] sm:$0xff]  ;;  %s5346_s28 = sshll.u32 %s5440_s27, 4  ;;  %s5347_s28 = int_to_ptr.vmem [resolvable:$false] %s5346_s28 }
  0x21   : > { %639 = vmatpush1.bf16.msra.mxu0 %v5316_v6  ;;  %v428_v29 = vadd.f32 %v5573_v9, %v389_v20  ;;  %v5607_v30 = vadd.f32 %v5573_v9, %v390_v21  ;;  %v5610_v31 = vadd.f32 %v5573_v9, %v391_v22  ;;  %v393_v32 = vmul.f32 %v5568_v8, %v354_v24  ;;  %v359_v45 = vld [vmem:[%s5578_s17 + $0x60] sm:$0xff]  ;;  %v360_v50 = vld [vmem:[%s5578_s17 + $0x68] sm:$0xff]  ;;  %v361_v51 = vld [vmem:[%s5578_s17 + $0x70] sm:$0xff]  ;;  %p5344_p12 = pnand %p5343_p11, %p5532_p5  ;;  %s5348_s23 = scalar_lea.vmem %s5347_s28, 8192 }
  0x22   : > { %640 = vmatprep.subr.bf16.mxu0 %v5317_v7  ;;  %v457_v35 = vmax.f32 %v425_v25, 0.0  ;;  %v458_v36 = vmax.f32 %v426_v26, 0.0  ;;  %v459_v37 = vmax.f32 %v427_v27, 0.0  ;;  %v5616_v38 = vadd.f32 %v5573_v9, %v392_v28  ;;  %v362_v58 = vld [vmem:[%s5578_s17 + $0x78] sm:$0xff]  ;;  %v363_v59 = vld [vmem:[%s5578_s17 + $0x80] sm:$0xff]  ;;  %v364_v60 = vld [vmem:[%s5578_s17 + $0x88] sm:$0xff]  ;;  %p5349_p0 = scmp.lt.s32.totalorder %s6674_s25, %s5347_s28  ;;  %p5350_p1 = scmp.lt.s32.totalorder %s5348_s23, %s5342_s26 }
  0x23   : > { %v460_v40 = vmax.f32 %v428_v29, 0.0  ;;  %v461_v41 = vmax.f32 %v5607_v30, 0.0  ;;  %v462_v42 = vmax.f32 %v5610_v31, 0.0  ;;  %v5622_v43 = vadd.f32 %v5573_v9, %v393_v32  ;;  %v365_v0 = vld [vmem:[%s5578_s17 + $0x90] sm:$0xff]  ;;  %v366_v1 = vld [vmem:[%s5578_s17 + $0x98] sm:$0xff]  ;;  %v367_v7 = vld [vmem:[%s5578_s17 + $0xa0] sm:$0xff]  ;;  %p5345_p13 = pneg %p5344_p12 }
  0x24   : > { %490 = vst.msk [vmem:[%s5628_s24] sm:$0xff] %vm489_vm0, %v457_v35  ;;  %491 = vst.msk [vmem:[%s5628_s24 + $0x8] sm:$0xff] %vm489_vm0, %v458_v36  ;;  %v522_v46 = vpack.c.bf16 %v458_v36, %v457_v35  ;;  %v463_v47 = vmax.f32 %v5616_v38, 0.0  ;;  %v394_v48 = vmul.f32 %v5568_v8, %v355_v33  ;;  %v395_v49 = vmul.f32 %v5568_v8, %v356_v34  ;;  %v368_v14 = vld [vmem:[%s5578_s17 + $0xa8] sm:$0xff]  ;;  %v370_v24 = vld [vmem:[%s5578_s17 + $0xb8] sm:$0xff]  ;;  %p5351_p2 = por %p5350_p1, %p5349_p0 }
  0x25   : > { %641 = vmatpush1.bf16.msra.mxu0 %v5319_v19  ;;  %492 = vst.msk [vmem:[%s5628_s24 + $0x10] sm:$0xff] %vm489_vm0, %v459_v37  ;;  %493 = vst.msk [vmem:[%s5628_s24 + $0x18] sm:$0xff] %vm489_vm0, %v460_v40  ;;  %v464_v52 = vmax.f32 %v5622_v43, 0.0  ;;  %v396_v53 = vmul.f32 %v5568_v8, %v357_v39  ;;  %v397_v56 = vmul.f32 %v5568_v8, %v358_v44  ;;  %v369_v19 = vld [vmem:[%s5578_s17 + $0xb0] sm:$0xff]  ;;  %v371_v28 = vld [vmem:[%s5578_s17 + $0xc0] sm:$0xff] }
  0x26   : > { %494 = vst.msk [vmem:[%s5628_s24 + $0x20] sm:$0xff] %vm489_vm0, %v461_v41  ;;  %495 = vst.msk [vmem:[%s5628_s24 + $0x28] sm:$0xff] %vm489_vm0, %v462_v42  ;;  %v5659_v54 = vadd.f32 %v5573_v9, %v394_v48  ;;  %v5662_v55 = vadd.f32 %v5573_v9, %v395_v49  ;;  %v398_v57 = vmul.f32 %v5568_v8, %v359_v45  ;;  %v372_v34 = vld [vmem:[%s5578_s17 + $0xc8] sm:$0xff]  ;;  %v374_v48 = vld [vmem:[%s5578_s17 + $0xd8] sm:$0xff]  ;;  %p5352_p3 = pnand %p5351_p2, %p5345_p13 }
  0x27   : > { %496 = vst.msk [vmem:[%s5628_s24 + $0x30] sm:$0xff] %vm489_vm0, %v463_v47  ;;  %497 = vst.msk [vmem:[%s5628_s24 + $0x38] sm:$0xff] %vm489_vm0, %v464_v52  ;;  %v5675_v61 = vadd.f32 %v5573_v9, %v396_v53  ;;  %v399_v62 = vmul.f32 %v5568_v8, %v360_v50  ;;  %v400_v63 = vmul.f32 %v5568_v8, %v361_v51 }
  0x28   : > { %4216 = vmatmul.mubr.msk.bf16.vlgmr.msra.gmra.mrb[0].mxu0 %vm489_vm0, %v522_v46  ;;  %v465_v3 = vmax.f32 %v5659_v54, 0.0  ;;  %v466_v4 = vmax.f32 %v5662_v55, 0.0  ;;  %v5684_v5 = vadd.f32 %v5573_v9, %v397_v56  ;;  %v5687_v6 = vadd.f32 %v5573_v9, %v398_v57 }
  0x29   : > { %676 = vmatprep.mubr.bf16.mxu0 %v5438_v2  ;;  %v467_v10 = vmax.f32 %v5675_v61, 0.0  ;;  %v5692_v11 = vadd.f32 %v5573_v9, %v399_v62  ;;  %v401_v12 = vmul.f32 %v5568_v8, %v362_v58  ;;  %v5696_v13 = vadd.f32 %v5573_v9, %v400_v63  ;;  %v5320_v61 = vld [vmem:[%s6830_s5 + $0x10] sm:$0xff]  }
  0x2a   : > { %v523_v15 = vpack.c.bf16 %v460_v40, %v459_v37  ;;  %498 = vst.msk [vmem:[%s5628_s24 + $0x40] sm:$0xff] %vm489_vm0, %v465_v3  ;;  %499 = vst.msk [vmem:[%s5628_s24 + $0x48] sm:$0xff] %vm489_vm0, %v466_v4  ;;  %v468_v16 = vmax.f32 %v5684_v5, 0.0  ;;  %v469_v17 = vmax.f32 %v5687_v6, 0.0  ;;  %v402_v18 = vmul.f32 %v5568_v8, %v363_v59  ;;  %v373_v40 = vld [vmem:[%s5578_s17 + $0xd0] sm:$0xff]  ;;  %v375_v59 = vld [vmem:[%s5578_s17 + $0xe0] sm:$0xff]  ;;  %4640 = vmatprep.subr.bf16.mxu0 %v5320_v61 }
  0x2b   : > { %500 = vst.msk [vmem:[%s5628_s24 + $0x50] sm:$0xff] %vm489_vm0, %v467_v10  ;;  %v470_v20 = vmax.f32 %v5692_v11, 0.0  ;;  %v5717_v21 = vadd.f32 %v5573_v9, %v401_v12  ;;  %v471_v22 = vmax.f32 %v5696_v13, 0.0  ;;  %v403_v23 = vmul.f32 %v5568_v8, %v364_v60  ;;  %4641 = vmatpush3.bf16.msra.mxu0 %v5320_v61  ;;  %v5323_v5 = vld [vmem:[%s6830_s5 + $0x38] sm:$0xff]   ;;  %v5324_v13 = vld [vmem:[%s6830_s5 + $0x40] sm:$0xff]  }
  0x2c   : > { %501 = vst.msk [vmem:[%s5628_s24 + $0x58] sm:$0xff] %vm489_vm0, %v468_v16  ;;  %502 = vst.msk [vmem:[%s5628_s24 + $0x60] sm:$0xff] %vm489_vm0, %v469_v17  ;;  %v5731_v25 = vadd.f32 %v5573_v9, %v402_v18  ;;  %v404_v26 = vmul.f32 %v5568_v8, %v365_v0  ;;  %v405_v27 = vmul.f32 %v5568_v8, %v366_v1  ;;  %v376_v1 = vld [vmem:[%s5578_s17 + $0xe8] sm:$0xff]  ;;  %v5439_v55 = vmov 0.0  }
  0x2d   : > { %503 = vst.msk [vmem:[%s5628_s24 + $0x68] sm:$0xff] %vm489_vm0, %v470_v20  ;;  %v472_v29 = vmax.f32 %v5717_v21, 0.0  ;;  %504 = vst.msk [vmem:[%s5628_s24 + $0x70] sm:$0xff] %vm489_vm0, %v471_v22  ;;  %v5746_v32 = vadd.f32 %v5573_v9, %v403_v23  ;;  %v406_v33 = vmul.f32 %v5568_v8, %v367_v7  ;;  %v407_v39 = vmul.f32 %v5568_v8, %v368_v14  ;;  %v377_v7 = vld [vmem:[%s5578_s17 + $0xf0] sm:$0xff] }
  0x2e   : > { %v473_v35 = vmax.f32 %v5731_v25, 0.0  ;;  %v5753_v36 = vadd.f32 %v5573_v9, %v404_v26  ;;  %v5756_v37 = vadd.f32 %v5573_v9, %v405_v27  ;;  %v408_v46 = vmul.f32 %v5568_v8, %v369_v19  ;;  %v378_v19 = vld [vmem:[%s5578_s17 + $0xf8] sm:$0xff]  ;;  %903 = vst.msk [vmem:[#allocation2 + $0x18] sm:$0xff] %vm898_vm1, %v5439_v55  ;;  %904 = vst.msk [vmem:[#allocation2 + $0x20] sm:$0xff] %vm898_vm1, %v5439_v55  ;;  %s6671_s17 = scalar_lea.hbm %s6833_s8, %s6836_s29 }
  0x2f   : > { %505 = vst.msk [vmem:[%s5628_s24 + $0x78] sm:$0xff] %vm489_vm0, %v472_v29  ;;  %v474_v44 = vmax.f32 %v5746_v32, 0.0  ;;  %v445_v45 = vadd.f32 %v5573_v9, %v406_v33  ;;  %v446_v51 = vadd.f32 %v5573_v9, %v407_v39  ;;  %v409_v53 = vmul.f32 %v5568_v8, %v370_v24 }
  0x30   : > { %4217 = vmatmul.mubr.msk.bf16.gmra.mrb[4].mxu0 %vm489_vm0, %v523_v15  ;;  %506 = vst.msk [vmem:[%s5628_s24 + $0x80] sm:$0xff] %vm489_vm0, %v473_v35  ;;  %v475_v49 = vmax.f32 %v5753_v36, 0.0  ;;  %v476_v50 = vmax.f32 %v5756_v37, 0.0  ;;  %v447_v57 = vadd.f32 %v5573_v9, %v408_v46  ;;  %v410_v58 = vmul.f32 %v5568_v8, %v371_v28 }
  0x31   : > { %686 = vmatprep.mubr.bf16.mxu0 %v5438_v2  ;;  %507 = vst.msk [vmem:[%s5628_s24 + $0x88] sm:$0xff] %vm489_vm0, %v474_v44  ;;  %v477_v56 = vmax.f32 %v445_v45, 0.0  ;;  %v524_v60 = vpack.c.bf16 %v462_v42, %v461_v41  ;;  %v478_v62 = vmax.f32 %v446_v51, 0.0  ;;  %v448_v63 = vadd.f32 %v5573_v9, %v409_v53 }
  0x32   : > { %508 = vst.msk [vmem:[%s5628_s24 + $0x90] sm:$0xff] %vm489_vm0, %v475_v49  ;;  %509 = vst.msk [vmem:[%s5628_s24 + $0x98] sm:$0xff] %vm489_vm0, %v476_v50  ;;  %v411_v0 = vmul.f32 %v5568_v8, %v372_v34  ;;  %v479_v30 = vmax.f32 %v447_v57, 0.0  ;;  %v449_v31 = vadd.f32 %v5573_v9, %v410_v58  ;;  %v412_v41 = vmul.f32 %v5568_v8, %v373_v40 }
  0x33   : > { %510 = vst.msk [vmem:[%s5628_s24 + $0xa0] sm:$0xff] %vm489_vm0, %v477_v56  ;;  %v413_v42 = vmul.f32 %v5568_v8, %v374_v48  ;;  %511 = vst.msk [vmem:[%s5628_s24 + $0xa8] sm:$0xff] %vm489_vm0, %v478_v62  ;;  %v532_v12 = vpack.c.bf16 %v478_v62, %v477_v56  ;;  %v480_v14 = vmax.f32 %v448_v63, 0.0  ;;  %v414_v18 = vmul.f32 %v5568_v8, %v375_v59 }
  0x34   : > { %v450_v15 = vadd.f32 %v5573_v9, %v411_v0  ;;  %512 = vst.msk [vmem:[%s5628_s24 + $0xb0] sm:$0xff] %vm489_vm0, %v479_v30  ;;  %v481_v23 = vmax.f32 %v449_v31, 0.0  ;;  %v451_v24 = vadd.f32 %v5573_v9, %v412_v41  ;;  %v415_v27 = vmul.f32 %v5568_v8, %v376_v1 }
  0x35   : > { %v452_v26 = vadd.f32 %v5573_v9, %v413_v42  ;;  %513 = vst.msk [vmem:[%s5628_s24 + $0xb8] sm:$0xff] %vm489_vm0, %v480_v14  ;;  %v533_v28 = vpack.c.bf16 %v480_v14, %v479_v30  ;;  %v453_v34 = vadd.f32 %v5573_v9, %v414_v18  ;;  %v416_v39 = vmul.f32 %v5568_v8, %v377_v7 }
  0x36   : > { %v482_v33 = vmax.f32 %v450_v15, 0.0  ;;  %514 = vst.msk [vmem:[%s5628_s24 + $0xc0] sm:$0xff] %vm489_vm0, %v481_v23  ;;  %v483_v40 = vmax.f32 %v451_v24, 0.0  ;;  %v454_v46 = vadd.f32 %v5573_v9, %v415_v27  ;;  %v417_v48 = vmul.f32 %v5568_v8, %v378_v19  ;;  %v5327_v19 = vld [vmem:[%s6830_s5 + $0x8] sm:$0xff]  }
  0x37   : > { %v484_v45 = vmax.f32 %v452_v26, 0.0  ;;  %v485_v53 = vmax.f32 %v453_v34, 0.0  ;;  %v455_v56 = vadd.f32 %v5573_v9, %v416_v39  ;;  %v525_v8 = vpack.c.bf16 %v464_v52, %v463_v47  ;;  %899 = vst.msk [vmem:[#allocation2] sm:$0xff] %vm898_vm1, %v5439_v55  ;;  %900 = vst.msk [vmem:[#allocation2 + $0x8] sm:$0xff] %vm898_vm1, %v5439_v55 }
  0x38   : > { %4218 = vmatmul.mubr.msk.bf16.gmra.mrb[8].mxu0 %vm489_vm0, %v524_v60  ;;  %515 = vst.msk [vmem:[%s5628_s24 + $0xc8] sm:$0xff] %vm489_vm0, %v482_v33  ;;  %v5827_v51 = vpack.c.bf16 %v482_v33, %v481_v23  ;;  %516 = vst.msk [vmem:[%s5628_s24 + $0xd0] sm:$0xff] %vm489_vm0, %v483_v40  ;;  %v486_v58 = vmax.f32 %v454_v46, 0.0  ;;  %v456_v59 = vadd.f32 %v5573_v9, %v417_v48 }
  0x39   : > { %696 = vmatprep.mubr.bf16.mxu0 %v5438_v2  ;;  %517 = vst.msk [vmem:[%s5628_s24 + $0xd8] sm:$0xff] %vm489_vm0, %v484_v45  ;;  %v5834_v57 = vpack.c.bf16 %v484_v45, %v483_v40  ;;  %518 = vst.msk [vmem:[%s5628_s24 + $0xe0] sm:$0xff] %vm489_vm0, %v485_v53  ;;  %v487_v60 = vmax.f32 %v455_v56, 0.0  ;;  %v526_v9 = vpack.c.bf16 %v466_v4, %v465_v3  ;;  %v5321_v3 = vld [vmem:[%s6830_s5 + $0x18] sm:$0xff]   ;;  %v5322_v4 = vld [vmem:[%s6830_s5 + $0x30] sm:$0xff]  }
  0x3a   : > { %519 = vst.msk [vmem:[%s5628_s24 + $0xe8] sm:$0xff] %vm489_vm0, %v486_v58  ;;  %v5845_v62 = vpack.c.bf16 %v486_v58, %v485_v53  ;;  %v488_v63 = vmax.f32 %v456_v59, 0.0  ;;  %v527_v38 = vpack.c.bf16 %v468_v16, %v467_v10  ;;  %v528_v43 = vpack.c.bf16 %v470_v20, %v469_v17  ;;  %4642 = vmatprep.subr.bf16.mxu0 %v5321_v3  ;;  %v5979_v16 = vld [vmem:[%s6829_s4] ss:$0 sm:$0xff]  ;;  %v5325_v56 = vld [vmem:[%s6830_s5 + $0x48] sm:$0xff]  }
  0x3b   : > { %520 = vst.msk [vmem:[%s5628_s24 + $0xf0] sm:$0xff] %vm489_vm0, %v487_v60  ;;  %v529_v47 = vpack.c.bf16 %v472_v29, %v471_v22  ;;  %v530_v52 = vpack.c.bf16 %v474_v44, %v473_v35  ;;  %v531_v54 = vpack.c.bf16 %v476_v50, %v475_v49  ;;  %4643 = vmatpush3.bf16.msra.mxu0 %v5321_v3 }
  0x3c   : > { %521 = vst.msk [vmem:[%s5628_s24 + $0xf8] sm:$0xff] %vm489_vm0, %v488_v63  ;;  %v5851_v0 = vpack.c.bf16 %v488_v63, %v487_v60  ;;  %4748 = vmatprep.subr.bf16.mxu1 %v5322_v4  ;;  %v6039_v63 = vld [vmem:[%s6830_s5 + $0x50] sm:$0xff]  }
  0x3d   : > { %906 = vst.msk [vmem:[#allocation2 + $0x30] sm:$0xff] %vm898_vm1, %v5439_v55  ;;  %907 = vst.msk [vmem:[#allocation2 + $0x38] sm:$0xff] %vm898_vm1, %v5439_v55  ;;  %4749 = vmatpush3.bf16.msra.mxu1 %v5322_v4 }
  0x3e   : > { %909 = vst.msk [vmem:[#allocation2 + $0x48] sm:$0xff] %vm898_vm1, %v5439_v55  ;;  %910 = vst.msk [vmem:[#allocation2 + $0x50] sm:$0xff] %vm898_vm1, %v5439_v55  ;;  %4750 = vmatprep.subr.bf16.mxu1 %v5323_v5  ;;  %v1039_v6 = vld [vmem:[#allocation2 + $0x1] sm:$0xff] }
  0x3f   : > { %912 = vst.msk [vmem:[#allocation2 + $0x60] sm:$0xff] %vm898_vm1, %v5439_v55  ;;  %913 = vst.msk [vmem:[#allocation2 + $0x68] sm:$0xff] %vm898_vm1, %v5439_v55 }
  0x40   : > { %4219 = vmatmul.mubr.msk.bf16.gmra.mrb[12].mxu0 %vm489_vm0, %v525_v8  ;;  %915 = vst.msk [vmem:[#allocation2 + $0x78] sm:$0xff] %vm898_vm1, %v5439_v55  ;;  %916 = vst.msk [vmem:[#allocation2 + $0x80] sm:$0xff] %vm898_vm1, %v5439_v55 }
  0x41   : > { %706 = vmatprep.mubr.bf16.mxu0 %v5438_v2  ;;  %918 = vst.msk [vmem:[#allocation2 + $0x90] sm:$0xff] %vm898_vm1, %v5439_v55  ;;  %919 = vst.msk [vmem:[#allocation2 + $0x98] sm:$0xff] %vm898_vm1, %v5439_v55  ;;  %4751 = vmatpush3.bf16.msra.mxu1 %v5323_v5 }
  0x42   : > { %921 = vst.msk [vmem:[#allocation2 + $0xa8] sm:$0xff] %vm898_vm1, %v5439_v55  ;;  %922 = vst.msk [vmem:[#allocation2 + $0xb0] sm:$0xff] %vm898_vm1, %v5439_v55  ;;  %4784 = vmatprep.subr.bf16.mxu1 %v5324_v13 }
  0x43   : > { %924 = vst.msk [vmem:[#allocation2 + $0xc0] sm:$0xff] %vm898_vm1, %v5439_v55  ;;  %925 = vst.msk [vmem:[#allocation2 + $0xc8] sm:$0xff] %vm898_vm1, %v5439_v55 }
  0x44   : > { %927 = vst.msk [vmem:[#allocation2 + $0xd8] sm:$0xff] %vm898_vm1, %v5439_v55  ;;  %928 = vst.msk [vmem:[#allocation2 + $0xe0] sm:$0xff] %vm898_vm1, %v5439_v55 }
  0x45   : > { %930 = vst.msk [vmem:[#allocation2 + $0xf0] sm:$0xff] %vm898_vm1, %v5439_v55  ;;  %931 = vst.msk [vmem:[#allocation2 + $0xf8] sm:$0xff] %vm898_vm1, %v5439_v55 }
  0x46   : > { %933 = vst.msk [vmem:[#allocation2 + $0x108] sm:$0xff] %vm898_vm1, %v5439_v55  ;;  %934 = vst.msk [vmem:[#allocation2 + $0x110] sm:$0xff] %vm898_vm1, %v5439_v55 }
  0x47   : > { %936 = vst.msk [vmem:[#allocation2 + $0x120] sm:$0xff] %vm898_vm1, %v5439_v55  ;;  %937 = vst.msk [vmem:[#allocation2 + $0x128] sm:$0xff] %vm898_vm1, %v5439_v55 }
  0x48   : > { %4220 = vmatmul.mubr.msk.bf16.gmra.mrb[16].mxu0 %vm489_vm0, %v526_v9  ;;  %939 = vst.msk [vmem:[#allocation2 + $0x138] sm:$0xff] %vm898_vm1, %v5439_v55  ;;  %940 = vst.msk [vmem:[#allocation2 + $0x140] sm:$0xff] %vm898_vm1, %v5439_v55 }
  0x49   : > { %716 = vmatprep.mubr.bf16.mxu0 %v5438_v2  ;;  %942 = vst.msk [vmem:[#allocation2 + $0x150] sm:$0xff] %vm898_vm1, %v5439_v55  ;;  %943 = vst.msk [vmem:[#allocation2 + $0x158] sm:$0xff] %vm898_vm1, %v5439_v55 }
  0x4a   : > { %945 = vst.msk [vmem:[#allocation2 + $0x168] sm:$0xff] %vm898_vm1, %v5439_v55  ;;  %946 = vst.msk [vmem:[#allocation2 + $0x170] sm:$0xff] %vm898_vm1, %v5439_v55 }
  0x4b   : > { %948 = vst.msk [vmem:[#allocation2 + $0x180] sm:$0xff] %vm898_vm1, %v5439_v55  ;;  %949 = vst.msk [vmem:[#allocation2 + $0x188] sm:$0xff] %vm898_vm1, %v5439_v55 }
  0x4c   : > { %951 = vst.msk [vmem:[#allocation2 + $0x198] sm:$0xff] %vm898_vm1, %v5439_v55  ;;  %952 = vst.msk [vmem:[#allocation2 + $0x1a0] sm:$0xff] %vm898_vm1, %v5439_v55 }
  0x4d   : > { %905 = vst.msk [vmem:[#allocation2 + $0x28] sm:$0x3] %vm901_vm2, %v5439_v55  ;;  %902 = vst.msk [vmem:[#allocation2 + $0x10] sm:$0x3] %vm901_vm2, %v5439_v55 }
  0x4e   : > { %908 = vst.msk [vmem:[#allocation2 + $0x40] sm:$0x3] %vm901_vm2, %v5439_v55  ;;  %911 = vst.msk [vmem:[#allocation2 + $0x58] sm:$0x3] %vm901_vm2, %v5439_v55 }
  0x4f   : > { %914 = vst.msk [vmem:[#allocation2 + $0x70] sm:$0x3] %vm901_vm2, %v5439_v55  ;;  %917 = vst.msk [vmem:[#allocation2 + $0x88] sm:$0x3] %vm901_vm2, %v5439_v55 }
  0x50   : > { %4221 = vmatmul.mubr.msk.bf16.gmra.mrb[20].mxu0 %vm489_vm0, %v527_v38  ;;  %920 = vst.msk [vmem:[#allocation2 + $0xa0] sm:$0x3] %vm901_vm2, %v5439_v55  ;;  %923 = vst.msk [vmem:[#allocation2 + $0xb8] sm:$0x3] %vm901_vm2, %v5439_v55 }
  0x51   : > { %726 = vmatprep.mubr.bf16.mxu0 %v5438_v2  ;;  %926 = vst.msk [vmem:[#allocation2 + $0xd0] sm:$0x3] %vm901_vm2, %v5439_v55  ;;  %929 = vst.msk [vmem:[#allocation2 + $0xe8] sm:$0x3] %vm901_vm2, %v5439_v55 }
  0x52   : > { %932 = vst.msk [vmem:[#allocation2 + $0x100] sm:$0x3] %vm901_vm2, %v5439_v55  ;;  %935 = vst.msk [vmem:[#allocation2 + $0x118] sm:$0x3] %vm901_vm2, %v5439_v55 }
  0x53   : > { %938 = vst.msk [vmem:[#allocation2 + $0x130] sm:$0x3] %vm901_vm2, %v5439_v55  ;;  %941 = vst.msk [vmem:[#allocation2 + $0x148] sm:$0x3] %vm901_vm2, %v5439_v55 }
  0x54   : > { %944 = vst.msk [vmem:[#allocation2 + $0x160] sm:$0x3] %vm901_vm2, %v5439_v55  ;;  %947 = vst.msk [vmem:[#allocation2 + $0x178] sm:$0x3] %vm901_vm2, %v5439_v55  ;;  %v1040_v10 = vld [vmem:[#allocation2 + $0x9] sm:$0xff] }
  0x55   : > { %950 = vst.msk [vmem:[#allocation2 + $0x190] sm:$0x3] %vm901_vm2, %v5439_v55  ;;  %953 = vst.msk [vmem:[#allocation2 + $0x1a8] sm:$0x3] %vm901_vm2, %v5439_v55  ;;  %v1071_v11 = vpack.c.bf16 %v1040_v10, %v1039_v6 }
  0x58   : > { %4222 = vmatmul.mubr.msk.bf16.gmra.mrb[24].mxu0 %vm489_vm0, %v528_v43 }
  0x59   : > { %736 = vmatprep.mubr.bf16.mxu0 %v5438_v2 }
  0x60   : > { %4223 = vmatmul.mubr.msk.bf16.gmra.mrb[28].mxu0 %vm489_vm0, %v529_v47 }
  0x61   : > { %746 = vmatprep.mubr.bf16.mxu0 %v5438_v2 }
  0x68   : > { %4224 = vmatmul.mubr.msk.bf16.gmra.mrb[32].mxu0 %vm489_vm0, %v530_v52 }
  0x69   : > { %756 = vmatprep.mubr.bf16.mxu0 %v5438_v2 }
  0x70   : > { %4225 = vmatmul.mubr.msk.bf16.gmra.mrb[36].mxu0 %vm489_vm0, %v531_v54 }
  0x71   : > { %766 = vmatprep.mubr.bf16.mxu0 %v5438_v2 }
  0x78   : > { %4226 = vmatmul.mubr.msk.bf16.gmra.mrb[40].mxu0 %vm489_vm0, %v532_v12 }
  0x79   : > { %776 = vmatprep.mubr.bf16.mxu0 %v5438_v2 }
  0x80   : > { %4227 = vmatmul.mubr.msk.bf16.gmra.mrb[44].mxu0 %vm489_vm0, %v533_v28 }
  0x81   : > { %786 = vmatprep.mubr.bf16.mxu0 %v5438_v2 }
  0x88   : > { %4228 = vmatmul.mubr.msk.bf16.gmra.mrb[48].mxu0 %vm489_vm0, %v5827_v51 }
  0x89   : > { %796 = vmatprep.mubr.bf16.mxu0 %v5438_v2 }
  0x90   : > { %4229 = vmatmul.mubr.msk.bf16.gmra.mrb[52].mxu0 %vm489_vm0, %v5834_v57 }
  0x91   : > { %806 = vmatprep.mubr.bf16.mxu0 %v5438_v2 }
  0x98   : > { %4230 = vmatmul.mubr.msk.bf16.gmra.mrb[56].mxu0 %vm489_vm0, %v5845_v62 }
  0x99   : > { %816 = vmatprep.mubr.bf16.mxu0 %v5438_v2  ;;  %v5326_v2 = vld [vmem:[%s6830_s5] sm:$0xff]  }
  0x9a   : > { %4676 = vmatprep.subr.bf16.mxu0 %v5326_v2 }
  0xa0   : > { %4231 = vmatmul.mubr.msk.bf16.gmra.mrb[60].mxu0 %vm489_vm0, %v5851_v0 }
  0xa1   : > { %4644 = vmatprep.mubr.msk.bf16.mxu0 %vm898_vm1, %v1071_v11 }
  0xfb   : > { %v5981_v17 = vpop.f32.mrb[0].mxu0 }
  0xfc   : > { %v670_v20 = vpop.f32.mrb[1].mxu0 }
  0xfd   : > { %v834_v21 = vadd.f32 %v5979_v16, %v670_v20  ;;  %v5987_v22 = vpop.f32.mrb[2].mxu0 }
  0xfe   : > { %v674_v25 = vpop.f32.mrb[3].mxu0 }
  0xff   : > { %v866_v29 = vmax.f32 %v834_v21, 0.0  ;;  %v835_v32 = vadd.f32 %v5979_v16, %v674_v25 }
 0x101   : > { %955 = vst.msk [vmem:[#allocation2 + $0x19] sm:$0xff] %vm898_vm1, %v866_v29  ;;  %v867_v35 = vmax.f32 %v835_v32, 0.0 }
 0x103   : > { %956 = vst.msk [vmem:[#allocation2 + $0x21] sm:$0xff] %vm898_vm1, %v867_v35  ;;  %v5992_v36 = vpop.f32.mrb[4].mxu0 }
 0x104   : > { %v680_v37 = vpop.f32.mrb[5].mxu0 }
 0x105   : > { %v836_v44 = vadd.f32 %v5979_v16, %v680_v37  ;;  %v5995_v49 = vpop.f32.mrb[6].mxu0 }
 0x106   : > { %v684_v50 = vpop.f32.mrb[7].mxu0 }
 0x107   : > { %v868_v1 = vmax.f32 %v836_v44, 0.0  ;;  %v837_v30 = vadd.f32 %v5979_v16, %v684_v50 }
 0x108   : > { %v1041_v41 = vld [vmem:[#allocation2 + $0x19] sm:$0xff] }
 0x109   : > { %957 = vst.msk [vmem:[#allocation2 + $0x31] sm:$0xff] %vm898_vm1, %v868_v1  ;;  %v869_v31 = vmax.f32 %v837_v30, 0.0  ;;  %v1840_v7 = vld [vmem:[#allocation2 + $0x18] sm:$0xff] }
 0x10a   : > { %v1042_v42 = vld [vmem:[#allocation2 + $0x21] sm:$0xff] }
 0x10b   : > { %v1841_v12 = vld [vmem:[#allocation2 + $0x20] sm:$0xff]  ;;  %958 = vst.msk [vmem:[#allocation2 + $0x39] sm:$0xff] %vm898_vm1, %v869_v31  ;;  %v6000_v14 = vpop.f32.mrb[8].mxu0  ;;  %v6002_v15 = vpack.c.bf16 %v1042_v42, %v1041_v41 }
 0x10c   : > { %v6004_v18 = vpack.c.bf16 %v1841_v12, %v1840_v7  ;;  %v690_v23 = vpop.f32.mrb[9].mxu0 }
 0x10d   : > { %v838_v24 = vadd.f32 %v5979_v16, %v690_v23  ;;  %v6010_v26 = vpop.f32.mrb[10].mxu0  ;;  %4645 = vmatmul.mubr.msk.bf16.vlgmr.msra.gmra.mrb[64].mxu0 %vm898_vm1, %v6002_v15 }
 0x10e   : > { %4752 = vmatprep.mubr.msk.bf16.mxu1 %vm898_vm1, %v6004_v18  ;;  %v694_v27 = vpop.f32.mrb[11].mxu0  ;;  %4677 = vmatpush3.bf16.msra.mxu0 %v5326_v2 }
 0x10f   : > { %v870_v28 = vmax.f32 %v838_v24, 0.0  ;;  %v839_v33 = vadd.f32 %v5979_v16, %v694_v27  ;;  %4678 = vmatprep.subr.bf16.mxu0 %v5327_v19 }
 0x110   : > { %v1043_v39 = vld [vmem:[#allocation2 + $0x31] sm:$0xff] }
 0x111   : > { %959 = vst.msk [vmem:[#allocation2 + $0x49] sm:$0xff] %vm898_vm1, %v870_v28  ;;  %v871_v34 = vmax.f32 %v839_v33, 0.0  ;;  %v1842_v45 = vld [vmem:[#allocation2 + $0x30] sm:$0xff] }
 0x112   : > { %v1044_v40 = vld [vmem:[#allocation2 + $0x39] sm:$0xff]  ;;  %4679 = vmatpush3.bf16.msra.mxu0 %v5327_v19 }
 0x113   : > { %v1843_v46 = vld [vmem:[#allocation2 + $0x38] sm:$0xff]  ;;  %960 = vst.msk [vmem:[#allocation2 + $0x51] sm:$0xff] %vm898_vm1, %v871_v34  ;;  %v6019_v48 = vpop.f32.mrb[12].mxu0  ;;  %v6021_v51 = vpack.c.bf16 %v1044_v40, %v1043_v39 }
 0x114   : > { %v6023_v53 = vpack.c.bf16 %v1843_v46, %v1842_v45  ;;  %v700_v57 = vpop.f32.mrb[13].mxu0 }
 0x115   : > { %v840_v58 = vadd.f32 %v5979_v16, %v700_v57  ;;  %v6029_v59 = vpop.f32.mrb[14].mxu0  ;;  %4648 = vmatprep.mubr.msk.bf16.mxu0 %vm898_vm1, %v6021_v51 }
 0x116   : > { %4753 = vmatmul.mubr.msk.bf16.vlgmr.msra.gmra.mrb[0].mxu1 %vm898_vm1, %v6023_v53  ;;  %v704_v8 = vpop.f32.mrb[15].mxu0 }
 0x117   : > { %4785 = vmatpush3.bf16.msra.mxu1 %v5324_v13  ;;  %v872_v60 = vmax.f32 %v840_v58, 0.0  ;;  %v841_v62 = vadd.f32 %v5979_v16, %v704_v8 }
 0x118   : > { %4786 = vmatprep.subr.bf16.mxu1 %v5325_v56  ;;  %v1045_v9 = vld [vmem:[#allocation2 + $0x49] sm:$0xff] }
 0x119   : > { %961 = vst.msk [vmem:[#allocation2 + $0x61] sm:$0xff] %vm898_vm1, %v872_v60  ;;  %v873_v0 = vmax.f32 %v841_v62, 0.0  ;;  %v1844_v43 = vld [vmem:[#allocation2 + $0x48] sm:$0xff] }
 0x11a   : > { %v1046_v38 = vld [vmem:[#allocation2 + $0x51] sm:$0xff] }
 0x11b   : > { %v1845_v47 = vld [vmem:[#allocation2 + $0x50] sm:$0xff]  ;;  %4787 = vmatpush3.bf16.msra.mxu1 %v5325_v56  ;;  %962 = vst.msk [vmem:[#allocation2 + $0x69] sm:$0xff] %vm898_vm1, %v873_v0  ;;  %v6043_v52 = vpop.f32.mrb[16].mxu0  ;;  %v6045_v54 = vpack.c.bf16 %v1046_v38, %v1045_v9 }
 0x11c   : > { %v6047_v55 = vpack.c.bf16 %v1845_v47, %v1844_v43  ;;  %4820 = vmatprep.subr.bf16.mxu1 %v6039_v63  ;;  %v710_v61 = vpop.f32.mrb[17].mxu0 }
 0x11d   : > { %v842_v3 = vadd.f32 %v5979_v16, %v710_v61  ;;  %v6051_v4 = vpop.f32.mrb[18].mxu0  ;;  %4649 = vmatmul.mubr.msk.bf16.gmra.mrb[68].mxu0 %vm898_vm1, %v6045_v54 }
 0x11e   : > { %4756 = vmatprep.mubr.msk.bf16.mxu1 %vm898_vm1, %v6047_v55  ;;  %v714_v5 = vpop.f32.mrb[19].mxu0 }
 0x11f   : > { %v874_v6 = vmax.f32 %v842_v3, 0.0  ;;  %v843_v10 = vadd.f32 %v5979_v16, %v714_v5 }
 0x120   : > { %v1047_v13 = vld [vmem:[#allocation2 + $0x61] sm:$0xff] }
 0x121   : > { %963 = vst.msk [vmem:[#allocation2 + $0x79] sm:$0xff] %vm898_vm1, %v874_v6  ;;  %v875_v11 = vmax.f32 %v843_v10, 0.0  ;;  %v1846_v20 = vld [vmem:[#allocation2 + $0x60] sm:$0xff] }
 0x122   : > { %v1048_v2 = vld [vmem:[#allocation2 + $0x69] sm:$0xff] }
 0x123   : > { %v1847_v21 = vld [vmem:[#allocation2 + $0x68] sm:$0xff]  ;;  %964 = vst.msk [vmem:[#allocation2 + $0x81] sm:$0xff] %vm898_vm1, %v875_v11  ;;  %v6060_v25 = vpop.f32.mrb[20].mxu0  ;;  %v6062_v29 = vpack.c.bf16 %v1048_v2, %v1047_v13 }
 0x124   : > { %v6064_v32 = vpack.c.bf16 %v1847_v21, %v1846_v20  ;;  %v720_v35 = vpop.f32.mrb[21].mxu0 }
 0x125   : > { %v844_v37 = vadd.f32 %v5979_v16, %v720_v35  ;;  %v6067_v44 = vpop.f32.mrb[22].mxu0  ;;  %4652 = vmatprep.mubr.msk.bf16.mxu0 %vm898_vm1, %v6062_v29  ;;  %v6117_v35 = vld [vmem:[%s6830_s5 + $0x20] sm:$0xff]  }
 0x126   : > { %4757 = vmatmul.mubr.msk.bf16.gmra.mrb[4].mxu1 %vm898_vm1, %v6064_v32  ;;  %v724_v50 = vpop.f32.mrb[23].mxu0  ;;  %4712 = vmatprep.subr.bf16.mxu0 %v6117_v35 }
 0x127   : > { %v876_v1 = vmax.f32 %v844_v37, 0.0  ;;  %v845_v30 = vadd.f32 %v5979_v16, %v724_v50 }
 0x128   : > { %v1049_v41 = vld [vmem:[#allocation2 + $0x79] sm:$0xff] }
 0x129   : > { %965 = vst.msk [vmem:[#allocation2 + $0x91] sm:$0xff] %vm898_vm1, %v876_v1  ;;  %v877_v31 = vmax.f32 %v845_v30, 0.0  ;;  %v1848_v7 = vld [vmem:[#allocation2 + $0x78] sm:$0xff] }
 0x12a   : > { %v1050_v42 = vld [vmem:[#allocation2 + $0x81] sm:$0xff] }
 0x12b   : > { %v1849_v12 = vld [vmem:[#allocation2 + $0x80] sm:$0xff]  ;;  %966 = vst.msk [vmem:[#allocation2 + $0x99] sm:$0xff] %vm898_vm1, %v877_v31  ;;  %v6076_v19 = vpop.f32.mrb[24].mxu0  ;;  %v6078_v23 = vpack.c.bf16 %v1050_v42, %v1049_v41 }
 0x12c   : > { %6840 = vst [vmem:[#allocation9_spill] sm:$0xff] %v6076_v19  ;;  %v6080_v24 = vpack.c.bf16 %v1849_v12, %v1848_v7  ;;  %v730_v27 = vpop.f32.mrb[25].mxu0 }
 0x12d   : > { %v846_v28 = vadd.f32 %v5979_v16, %v730_v27  ;;  %v6083_v33 = vpop.f32.mrb[26].mxu0  ;;  %4653 = vmatmul.mubr.msk.bf16.gmra.mrb[72].mxu0 %vm898_vm1, %v6078_v23 }
 0x12e   : > { %6841 = vst [vmem:[#allocation10_spill] sm:$0xff] %v6083_v33  ;;  %4760 = vmatprep.mubr.msk.bf16.mxu1 %vm898_vm1, %v6080_v24  ;;  %v734_v34 = vpop.f32.mrb[27].mxu0 }
 0x12f   : > { %v878_v39 = vmax.f32 %v846_v28, 0.0  ;;  %v847_v40 = vadd.f32 %v5979_v16, %v734_v34 }
 0x130   : > { %v1051_v46 = vld [vmem:[#allocation2 + $0x91] sm:$0xff] }
 0x131   : > { %967 = vst.msk [vmem:[#allocation2 + $0xa9] sm:$0xff] %vm898_vm1, %v878_v39  ;;  %v879_v45 = vmax.f32 %v847_v40, 0.0  ;;  %v1850_v57 = vld [vmem:[#allocation2 + $0x90] sm:$0xff] }
 0x132   : > { %v1052_v56 = vld [vmem:[#allocation2 + $0x99] sm:$0xff] }
 0x133   : > { %v1851_v58 = vld [vmem:[#allocation2 + $0x98] sm:$0xff]  ;;  %968 = vst.msk [vmem:[#allocation2 + $0xb1] sm:$0xff] %vm898_vm1, %v879_v45  ;;  %v6092_v8 = vpop.f32.mrb[28].mxu0  ;;  %v6094_v60 = vpack.c.bf16 %v1052_v56, %v1051_v46 }
 0x134   : > { %v6096_v62 = vpack.c.bf16 %v1851_v58, %v1850_v57  ;;  %v740_v0 = vpop.f32.mrb[29].mxu0 }
 0x135   : > { %v848_v9 = vadd.f32 %v5979_v16, %v740_v0  ;;  %v6099_v38 = vpop.f32.mrb[30].mxu0  ;;  %4656 = vmatprep.mubr.msk.bf16.mxu0 %vm898_vm1, %v6094_v60 }
 0x136   : > { %6842 = vst [vmem:[#allocation11_spill] sm:$0xff] %v6099_v38  ;;  %4761 = vmatmul.mubr.msk.bf16.gmra.mrb[8].mxu1 %vm898_vm1, %v6096_v62  ;;  %v744_v43 = vpop.f32.mrb[31].mxu0 }
 0x137   : > { %v880_v47 = vmax.f32 %v848_v9, 0.0  ;;  %v849_v61 = vadd.f32 %v5979_v16, %v744_v43 }
 0x138   : > { %v1053_v5 = vld [vmem:[#allocation2 + $0xa9] sm:$0xff] }
 0x139   : > { %969 = vst.msk [vmem:[#allocation2 + $0xc1] sm:$0xff] %vm898_vm1, %v880_v47  ;;  %v881_v3 = vmax.f32 %v849_v61, 0.0  ;;  %v1852_v10 = vld [vmem:[#allocation2 + $0xa8] sm:$0xff] }
 0x13a   : > { %v1054_v6 = vld [vmem:[#allocation2 + $0xb1] sm:$0xff] }
 0x13b   : > { %v1853_v11 = vld [vmem:[#allocation2 + $0xb0] sm:$0xff]  ;;  %970 = vst.msk [vmem:[#allocation2 + $0xc9] sm:$0xff] %vm898_vm1, %v881_v3  ;;  %v6108_v13 = vpop.f32.mrb[32].mxu0  ;;  %v6110_v2 = vpack.c.bf16 %v1054_v6, %v1053_v5 }
 0x13c   : > { %6843 = vst [vmem:[#allocation12_spill] sm:$0xff] %v6108_v13  ;;  %v6112_v20 = vpack.c.bf16 %v1853_v11, %v1852_v10  ;;  %v750_v21 = vpop.f32.mrb[33].mxu0 }
 0x13d   : > { %v850_v37 = vadd.f32 %v5979_v16, %v750_v21  ;;  %v6120_v50 = vpop.f32.mrb[34].mxu0  ;;  %4657 = vmatmul.mubr.msk.bf16.gmra.mrb[76].mxu0 %vm898_vm1, %v6110_v2 }
 0x13e   : > { %6844 = vst [vmem:[#allocation13_spill] sm:$0xff] %v6120_v50  ;;  %4764 = vmatprep.mubr.msk.bf16.mxu1 %vm898_vm1, %v6112_v20  ;;  %v754_v1 = vpop.f32.mrb[35].mxu0 }
 0x13f   : > { %v882_v30 = vmax.f32 %v850_v37, 0.0  ;;  %v851_v31 = vadd.f32 %v5979_v16, %v754_v1 }
 0x140   : > { %v1055_v42 = vld [vmem:[#allocation2 + $0xc1] sm:$0xff] }
 0x141   : > { %971 = vst.msk [vmem:[#allocation2 + $0xd9] sm:$0xff] %vm898_vm1, %v882_v30  ;;  %v883_v41 = vmax.f32 %v851_v31, 0.0  ;;  %v1854_v12 = vld [vmem:[#allocation2 + $0xc0] sm:$0xff] }
 0x142   : > { %v1056_v7 = vld [vmem:[#allocation2 + $0xc9] sm:$0xff] }
 0x143   : > { %v1855_v27 = vld [vmem:[#allocation2 + $0xc8] sm:$0xff]  ;;  %972 = vst.msk [vmem:[#allocation2 + $0xe1] sm:$0xff] %vm898_vm1, %v883_v41  ;;  %v6130_v28 = vpop.f32.mrb[36].mxu0  ;;  %v6132_v34 = vpack.c.bf16 %v1056_v7, %v1055_v42 }
 0x144   : > { %6845 = vst [vmem:[#allocation14_spill] sm:$0xff] %v6130_v28  ;;  %v6134_v39 = vpack.c.bf16 %v1855_v27, %v1854_v12  ;;  %v760_v40 = vpop.f32.mrb[37].mxu0 }
 0x145   : > { %v852_v45 = vadd.f32 %v5979_v16, %v760_v40  ;;  %v6137_v46 = vpop.f32.mrb[38].mxu0  ;;  %4660 = vmatprep.mubr.msk.bf16.mxu0 %vm898_vm1, %v6132_v34 }
 0x146   : > { %6846 = vst [vmem:[#allocation15_spill] sm:$0xff] %v6137_v46  ;;  %4765 = vmatmul.mubr.msk.bf16.gmra.mrb[12].mxu1 %vm898_vm1, %v6134_v39  ;;  %v764_v56 = vpop.f32.mrb[39].mxu0  ;;  %v5335_v46 = vld [vmem:[%s6830_s5 + $0x78] sm:$0xff]  }
 0x147   : > { %v884_v57 = vmax.f32 %v852_v45, 0.0  ;;  %v853_v58 = vadd.f32 %v5979_v16, %v764_v56 }
 0x148   : > { %v1057_v9 = vld [vmem:[#allocation2 + $0xd9] sm:$0xff] }
 0x149   : > { %973 = vst.msk [vmem:[#allocation2 + $0xf1] sm:$0xff] %vm898_vm1, %v884_v57  ;;  %v885_v0 = vmax.f32 %v853_v58, 0.0  ;;  %v1856_v47 = vld [vmem:[#allocation2 + $0xd8] sm:$0xff] }
 0x14a   : > { %v1058_v43 = vld [vmem:[#allocation2 + $0xe1] sm:$0xff] }
 0x14b   : > { %v1857_v61 = vld [vmem:[#allocation2 + $0xe0] sm:$0xff]  ;;  %974 = vst.msk [vmem:[#allocation2 + $0xf9] sm:$0xff] %vm898_vm1, %v885_v0  ;;  %v6146_v3 = vpop.f32.mrb[40].mxu0  ;;  %v6148_v5 = vpack.c.bf16 %v1058_v43, %v1057_v9 }
 0x14c   : > { %6847 = vst [vmem:[#allocation16_spill] sm:$0xff] %v6146_v3  ;;  %v6150_v6 = vpack.c.bf16 %v1857_v61, %v1856_v47  ;;  %v770_v10 = vpop.f32.mrb[41].mxu0 }
 0x14d   : > { %v854_v11 = vadd.f32 %v5979_v16, %v770_v10  ;;  %v6153_v21 = vpop.f32.mrb[42].mxu0  ;;  %4661 = vmatmul.mubr.msk.bf16.gmra.mrb[80].mxu0 %vm898_vm1, %v6148_v5 }
 0x14e   : > { %6848 = vst [vmem:[#allocation17_spill] sm:$0xff] %v6153_v21  ;;  %4768 = vmatprep.mubr.msk.bf16.mxu1 %vm898_vm1, %v6150_v6  ;;  %v774_v37 = vpop.f32.mrb[43].mxu0 }
 0x14f   : > { %v886_v1 = vmax.f32 %v854_v11, 0.0  ;;  %v855_v30 = vadd.f32 %v5979_v16, %v774_v37 }
 0x150   : > { %v1059_v41 = vld [vmem:[#allocation2 + $0xf1] sm:$0xff] }
 0x151   : > { %975 = vst.msk [vmem:[#allocation2 + $0x109] sm:$0xff] %vm898_vm1, %v886_v1  ;;  %v887_v31 = vmax.f32 %v855_v30, 0.0  ;;  %v1858_v7 = vld [vmem:[#allocation2 + $0xf0] sm:$0xff] }
 0x152   : > { %v1060_v42 = vld [vmem:[#allocation2 + $0xf9] sm:$0xff] }
 0x153   : > { %v1859_v12 = vld [vmem:[#allocation2 + $0xf8] sm:$0xff]  ;;  %976 = vst.msk [vmem:[#allocation2 + $0x111] sm:$0xff] %vm898_vm1, %v887_v31  ;;  %v6162_v27 = vpop.f32.mrb[44].mxu0  ;;  %v6164_v40 = vpack.c.bf16 %v1060_v42, %v1059_v41 }
 0x154   : > { %6849 = vst [vmem:[#allocation18_spill] sm:$0xff] %v6162_v27  ;;  %v6166_v45 = vpack.c.bf16 %v1859_v12, %v1858_v7  ;;  %v780_v56 = vpop.f32.mrb[45].mxu0 }
 0x155   : > { %v856_v57 = vadd.f32 %v5979_v16, %v780_v56  ;;  %v6169_v58 = vpop.f32.mrb[46].mxu0  ;;  %4664 = vmatprep.mubr.msk.bf16.mxu0 %vm898_vm1, %v6164_v40 }
 0x156   : > { %6850 = vst [vmem:[#allocation19_spill] sm:$0xff] %v6169_v58  ;;  %4769 = vmatmul.mubr.msk.bf16.gmra.mrb[16].mxu1 %vm898_vm1, %v6166_v45  ;;  %v784_v0 = vpop.f32.mrb[47].mxu0 }
 0x157   : > { %v888_v9 = vmax.f32 %v856_v57, 0.0  ;;  %v857_v43 = vadd.f32 %v5979_v16, %v784_v0 }
 0x158   : > { %v1061_v61 = vld [vmem:[#allocation2 + $0x109] sm:$0xff] }
 0x159   : > { %977 = vst.msk [vmem:[#allocation2 + $0x121] sm:$0xff] %vm898_vm1, %v888_v9  ;;  %v889_v47 = vmax.f32 %v857_v43, 0.0  ;;  %v1860_v11 = vld [vmem:[#allocation2 + $0x108] sm:$0xff] }
 0x15a   : > { %v1062_v10 = vld [vmem:[#allocation2 + $0x111] sm:$0xff] }
 0x15b   : > { %v1861_v37 = vld [vmem:[#allocation2 + $0x110] sm:$0xff]  ;;  %978 = vst.msk [vmem:[#allocation2 + $0x129] sm:$0xff] %vm898_vm1, %v889_v47  ;;  %v6178_v1 = vpop.f32.mrb[48].mxu0  ;;  %v6180_v30 = vpack.c.bf16 %v1062_v10, %v1061_v61 }
 0x15c   : > { %6851 = vst [vmem:[#allocation20_spill] sm:$0xff] %v6178_v1  ;;  %v6182_v31 = vpack.c.bf16 %v1861_v37, %v1860_v11  ;;  %v790_v41 = vpop.f32.mrb[49].mxu0 }
 0x15d   : > { %v858_v42 = vadd.f32 %v5979_v16, %v790_v41  ;;  %v6185_v7 = vpop.f32.mrb[50].mxu0  ;;  %4665 = vmatmul.mubr.msk.bf16.gmra.mrb[84].mxu0 %vm898_vm1, %v6180_v30 }
 0x15e   : > { %6852 = vst [vmem:[#allocation21_spill] sm:$0xff] %v6185_v7  ;;  %4772 = vmatprep.mubr.msk.bf16.mxu1 %vm898_vm1, %v6182_v31  ;;  %v794_v12 = vpop.f32.mrb[51].mxu0 }
 0x15f   : > { %v890_v56 = vmax.f32 %v858_v42, 0.0  ;;  %v859_v57 = vadd.f32 %v5979_v16, %v794_v12 }
 0x160   : > { %v1063_v9 = vld [vmem:[#allocation2 + $0x121] sm:$0xff] }
 0x161   : > { %979 = vst.msk [vmem:[#allocation2 + $0x139] sm:$0xff] %vm898_vm1, %v890_v56  ;;  %v891_v0 = vmax.f32 %v859_v57, 0.0  ;;  %v1862_v47 = vld [vmem:[#allocation2 + $0x120] sm:$0xff] }
 0x162   : > { %v1064_v43 = vld [vmem:[#allocation2 + $0x129] sm:$0xff] }
 0x163   : > { %v1863_v61 = vld [vmem:[#allocation2 + $0x128] sm:$0xff]  ;;  %980 = vst.msk [vmem:[#allocation2 + $0x141] sm:$0xff] %vm898_vm1, %v891_v0  ;;  %v6194_v10 = vpop.f32.mrb[52].mxu0  ;;  %v6196_v11 = vpack.c.bf16 %v1064_v43, %v1063_v9 }
 0x164   : > { %6853 = vst [vmem:[#allocation22_spill] sm:$0xff] %v6194_v10  ;;  %v6198_v37 = vpack.c.bf16 %v1863_v61, %v1862_v47  ;;  %v800_v41 = vpop.f32.mrb[53].mxu0 }
 0x165   : > { %v860_v42 = vadd.f32 %v5979_v16, %v800_v41  ;;  %v6201_v7 = vpop.f32.mrb[54].mxu0  ;;  %4668 = vmatprep.mubr.msk.bf16.mxu0 %vm898_vm1, %v6196_v11 }
 0x166   : > { %6854 = vst [vmem:[#allocation23_spill] sm:$0xff] %v6201_v7  ;;  %4773 = vmatmul.mubr.msk.bf16.gmra.mrb[20].mxu1 %vm898_vm1, %v6198_v37  ;;  %v804_v12 = vpop.f32.mrb[55].mxu0 }
 0x167   : > { %v892_v56 = vmax.f32 %v860_v42, 0.0  ;;  %v861_v57 = vadd.f32 %v5979_v16, %v804_v12 }
 0x168   : > { %v1065_v9 = vld [vmem:[#allocation2 + $0x139] sm:$0xff] }
 0x169   : > { %981 = vst.msk [vmem:[#allocation2 + $0x151] sm:$0xff] %vm898_vm1, %v892_v56  ;;  %v893_v0 = vmax.f32 %v861_v57, 0.0  ;;  %v1864_v47 = vld [vmem:[#allocation2 + $0x138] sm:$0xff] }
 0x16a   : > { %v1066_v43 = vld [vmem:[#allocation2 + $0x141] sm:$0xff] }
 0x16b   : > { %v1865_v61 = vld [vmem:[#allocation2 + $0x140] sm:$0xff]  ;;  %982 = vst.msk [vmem:[#allocation2 + $0x159] sm:$0xff] %vm898_vm1, %v893_v0  ;;  %v6210_v41 = vpop.f32.mrb[56].mxu0  ;;  %v6212_v7 = vpack.c.bf16 %v1066_v43, %v1065_v9 }
 0x16c   : > { %6855 = vst [vmem:[#allocation24_spill] sm:$0xff] %v6210_v41  ;;  %v6214_v1 = vpack.c.bf16 %v1865_v61, %v1864_v47  ;;  %v810_v10 = vpop.f32.mrb[57].mxu0 }
 0x16d   : > { %v862_v42 = vadd.f32 %v5979_v16, %v810_v10  ;;  %v6217_v21 = vpop.f32.mrb[58].mxu0  ;;  %4669 = vmatmul.mubr.msk.bf16.gmra.mrb[88].mxu0 %vm898_vm1, %v6212_v7 }
 0x16e   : > { %6856 = vst [vmem:[#allocation25_spill] sm:$0xff] %v6217_v21  ;;  %4776 = vmatprep.mubr.msk.bf16.mxu1 %vm898_vm1, %v6214_v1  ;;  %v814_v12 = vpop.f32.mrb[59].mxu0 }
 0x16f   : > { %v894_v56 = vmax.f32 %v862_v42, 0.0  ;;  %v863_v57 = vadd.f32 %v5979_v16, %v814_v12 }
 0x170   : > { %v1067_v9 = vld [vmem:[#allocation2 + $0x151] sm:$0xff] }
 0x171   : > { %983 = vst.msk [vmem:[#allocation2 + $0x169] sm:$0xff] %vm898_vm1, %v894_v56  ;;  %v895_v0 = vmax.f32 %v863_v57, 0.0  ;;  %v1866_v47 = vld [vmem:[#allocation2 + $0x150] sm:$0xff] }
 0x172   : > { %v1068_v43 = vld [vmem:[#allocation2 + $0x159] sm:$0xff] }
 0x173   : > { %v1867_v61 = vld [vmem:[#allocation2 + $0x158] sm:$0xff]  ;;  %984 = vst.msk [vmem:[#allocation2 + $0x171] sm:$0xff] %vm898_vm1, %v895_v0  ;;  %v6226_v10 = vpop.f32.mrb[60].mxu0  ;;  %v6228_v21 = vpack.c.bf16 %v1068_v43, %v1067_v9  ;;  %v987_v0 = vld [vmem:[#allocation2] sm:$0xff]  ;;  %v988_v9 = vld [vmem:[#allocation2 + $0x8] sm:$0xff] }
 0x174   : > { %6857 = vst [vmem:[#allocation26_spill] sm:$0xff] %v6226_v10  ;;  %v6230_v41 = vpack.c.bf16 %v1867_v61, %v1866_v47  ;;  %v820_v58 = vpop.f32.mrb[61].mxu0 }
 0x175   : > { %v864_v42 = vadd.f32 %v5979_v16, %v820_v58  ;;  %v6233_v3 = vpop.f32.mrb[62].mxu0  ;;  %4672 = vmatprep.mubr.msk.bf16.mxu0 %vm898_vm1, %v6228_v21 }
 0x176   : > { %6858 = vst [vmem:[#allocation27_spill] sm:$0xff] %v6233_v3  ;;  %4777 = vmatmul.mubr.msk.bf16.gmra.mrb[24].mxu1 %vm898_vm1, %v6230_v41  ;;  %v824_v12 = vpop.f32.mrb[63].mxu0  ;;  %v1019_v3 = vpack.c.bf16 %v988_v9, %v987_v0  ;;  %v5333_v9 = vld [vmem:[%s6830_s5 + $0x68] sm:$0xff]  }
 0x177   : > { %v896_v56 = vmax.f32 %v864_v42, 0.0  ;;  %v865_v57 = vadd.f32 %v5979_v16, %v824_v12 }
 0x178   : > { %v1069_v47 = vld [vmem:[#allocation2 + $0x169] sm:$0xff] }
 0x179   : > { %985 = vst.msk [vmem:[#allocation2 + $0x181] sm:$0xff] %vm898_vm1, %v896_v56  ;;  %v897_v43 = vmax.f32 %v865_v57, 0.0  ;;  %v1868_v58 = vld [vmem:[#allocation2 + $0x168] sm:$0xff] }
 0x17a   : > { %v1070_v61 = vld [vmem:[#allocation2 + $0x171] sm:$0xff]  ;;  %v5331_v56 = vld [vmem:[%s6830_s5 + $0x28] sm:$0xff]  }
 0x17b   : > { %v1869_v10 = vld [vmem:[#allocation2 + $0x170] sm:$0xff]  ;;  %986 = vst.msk [vmem:[#allocation2 + $0x189] sm:$0xff] %vm898_vm1, %v897_v43  ;;  %v6242_v27 = vpack.c.bf16 %v1070_v61, %v1069_v47  ;;  %v1544_v61 = vld [vmem:[#allocation2 + $0x7a] sm:$0xff] }
 0x17c   : > { %v6244_v50 = vpack.c.bf16 %v1869_v10, %v1868_v58  ;;  %v1542_v10 = vld [vmem:[#allocation2 + $0x62] sm:$0xff]  ;;  %v1543_v57 = vld [vmem:[#allocation2 + $0x6a] sm:$0xff] }
 0x17d   : > { %4673 = vmatmul.mubr.msk.bf16.gmra.mrb[92].mxu0 %vm898_vm1, %v6242_v27  ;;  %v6342_v43 = vpack.c.bf16 %v1543_v57, %v1542_v10  ;;  %v6355_v47 = vld [vmem:[%s6830_s5 + $0x70] sm:$0xff]   ;;  %v1545_v58 = vld [vmem:[#allocation2 + $0x82] sm:$0xff] }
 0x17e   : > { %4780 = vmatprep.mubr.msk.bf16.mxu1 %vm898_vm1, %v6244_v50  ;;  %4680 = vmatprep.mubr.msk.bf16.mxu0 %vm898_vm1, %v1019_v3  ;;  %v5329_v3 = vld [vmem:[%s6830_s5 + $0x58] sm:$0xff]   ;;  %v1558_v57 = vld [vmem:[#allocation2 + $0x122] sm:$0xff] }
 0x17f   : > { %v1557_v10 = vld [vmem:[#allocation2 + $0x112] sm:$0xff] }
 0x180   : > { %v1870_v16 = vld [vmem:[#allocation2 + $0x180] sm:$0xff] }
 0x182   : > { %v1871_v42 = vld [vmem:[#allocation2 + $0x188] sm:$0xff] }
 0x183   : > { %v6251_v12 = vpack.c.bf16 %v1871_v42, %v1870_v16  ;;  %v1546_v16 = vld [vmem:[#allocation2 + $0x92] sm:$0xff]  ;;  %v1547_v42 = vld [vmem:[#allocation2 + $0x9a] sm:$0xff] }
 0x185   : > { %4681 = vmatmul.mubr.msk.bf16.vlgmr.msra.gmra.mrb[64].mxu0 %vm898_vm1, %v6004_v18  ;;  %4781 = vmatmul.mubr.msk.bf16.gmra.mrb[28].mxu1 %vm898_vm1, %v6251_v12  ;;  %v1534_v18 = vld [vmem:[#allocation2 + $0x2] sm:$0xff] }
 0x186   : > { %4684 = vmatprep.mubr.msk.bf16.mxu0 %vm898_vm1, %v6023_v53  ;;  %4788 = vmatprep.mubr.msk.bf16.mxu1 %vm898_vm1, %v6002_v15  ;;  %v5332_v15 = vld [vmem:[%s6830_s5 + $0x60] sm:$0xff]  }
 0x187   : > { %4713 = vmatpush3.bf16.msra.mxu0 %v6117_v35 }
 0x188   : > { %4714 = vmatprep.subr.bf16.mxu0 %v5331_v56 }
 0x18b   : > { %4715 = vmatpush3.bf16.msra.mxu0 %v5331_v56  ;;  %v6357_v56 = vpack.c.bf16 %v1545_v58, %v1544_v61 }
 0x18d   : > { %4685 = vmatmul.mubr.msk.bf16.gmra.mrb[68].mxu0 %vm898_vm1, %v6047_v55  ;;  %4789 = vmatmul.mubr.msk.bf16.vlgmr.msra.gmra.mrb[0].mxu1 %vm898_vm1, %v6021_v51  ;;  %v1535_v51 = vld [vmem:[#allocation2 + $0xa] sm:$0xff] }
 0x18e   : > { %4821 = vmatpush3.bf16.msra.mxu1 %v6039_v63  ;;  %4688 = vmatprep.mubr.msk.bf16.mxu0 %vm898_vm1, %v6064_v32  ;;  %v1566_v53 = vpack.c.bf16 %v1535_v51, %v1534_v18  ;;  %v1536_v63 = vld [vmem:[#allocation2 + $0x1a] sm:$0xff]  ;;  %v2177_v55 = vld [vmem:[#allocation2 + $0x189] sm:$0xff]  ;;  %v1549_v18 = vld [vmem:[#allocation2 + $0xb2] sm:$0xff] }
 0x18f   : > { %4792 = vmatprep.mubr.msk.bf16.mxu1 %vm898_vm1, %v6045_v54  ;;  %4822 = vmatprep.subr.bf16.mxu1 %v5329_v3  ;;  %v1537_v54 = vld [vmem:[#allocation2 + $0x22] sm:$0xff]  ;;  %v1539_v32 = vld [vmem:[#allocation2 + $0x3a] sm:$0xff] }
 0x190   : > { %v1550_v51 = vld [vmem:[#allocation2 + $0xc2] sm:$0xff] }
 0x192   : > { %4823 = vmatpush3.bf16.msra.mxu1 %v5329_v3  ;;  %v6360_v3 = vpack.c.bf16 %v1547_v42, %v1546_v16  ;;  %v1560_v16 = vld [vmem:[#allocation2 + $0x13a] sm:$0xff]  ;;  %v1561_v42 = vld [vmem:[#allocation2 + $0x142] sm:$0xff] }
 0x193   : > { %4856 = vmatprep.subr.bf16.mxu1 %v5332_v15 }
 0x195   : > { %4689 = vmatmul.mubr.msk.bf16.gmra.mrb[72].mxu0 %vm898_vm1, %v6080_v24  ;;  %4793 = vmatmul.mubr.msk.bf16.gmra.mrb[4].mxu1 %vm898_vm1, %v6062_v29  ;;  %v1538_v29 = vld [vmem:[#allocation2 + $0x32] sm:$0xff] }
 0x196   : > { %4692 = vmatprep.mubr.msk.bf16.mxu0 %vm898_vm1, %v6096_v62  ;;  %4796 = vmatprep.mubr.msk.bf16.mxu1 %vm898_vm1, %v6078_v23  ;;  %v2176_v23 = vld [vmem:[#allocation2 + $0x181] sm:$0xff]  ;;  %v6329_v35 = vpack.c.bf16 %v1539_v32, %v1538_v29  ;;  %v1554_v32 = vld [vmem:[#allocation2 + $0xf2] sm:$0xff] }
 0x197   : > { %v1553_v29 = vld [vmem:[#allocation2 + $0xe2] sm:$0xff] }
 0x19d   : > { %4693 = vmatmul.mubr.msk.bf16.gmra.mrb[76].mxu0 %vm898_vm1, %v6112_v20  ;;  %4797 = vmatmul.mubr.msk.bf16.gmra.mrb[8].mxu1 %vm898_vm1, %v6094_v60  ;;  %v1567_v60 = vpack.c.bf16 %v1537_v54, %v1536_v63 }
 0x19e   : > { %4696 = vmatprep.mubr.msk.bf16.mxu0 %vm898_vm1, %v6134_v39  ;;  %4800 = vmatprep.mubr.msk.bf16.mxu1 %vm898_vm1, %v6110_v2  ;;  %v6327_v2 = vpack.c.bf16 %v2177_v55, %v2176_v23  ;;  %v1552_v55 = vld [vmem:[#allocation2 + $0xda] sm:$0xff] }
 0x19f   : > { %v1555_v23 = vld [vmem:[#allocation2 + $0xfa] sm:$0xff] }
 0x1a5   : > { %4697 = vmatmul.mubr.msk.bf16.gmra.mrb[80].mxu0 %vm898_vm1, %v6150_v6  ;;  %4801 = vmatmul.mubr.msk.bf16.gmra.mrb[12].mxu1 %vm898_vm1, %v6132_v34  ;;  %v1540_v34 = vld [vmem:[#allocation2 + $0x4a] sm:$0xff] }
 0x1a6   : > { %4700 = vmatprep.mubr.msk.bf16.mxu0 %vm898_vm1, %v6166_v45  ;;  %4804 = vmatprep.mubr.msk.bf16.mxu1 %vm898_vm1, %v6148_v5  ;;  %v1541_v5 = vld [vmem:[#allocation2 + $0x52] sm:$0xff] }
 0x1a7   : > { %v6337_v0 = vpack.c.bf16 %v1541_v5, %v1540_v34  ;;  %v6384_v34 = vpack.c.bf16 %v1555_v23, %v1554_v32  ;;  %v1556_v5 = vld [vmem:[#allocation2 + $0x10a] sm:$0xff]  ;;  %v2482_v23 = vld [vmem:[#allocation2 + $0x182] sm:$0xff] }
 0x1a8   : > { %v6394_v61 = vpack.c.bf16 %v1557_v10, %v1556_v5  ;;  %v2483_v5 = vld [vmem:[#allocation2 + $0x18a] sm:$0xff]  ;;  %v2760_v10 = vld [vmem:[#allocation2 + $0x38] sm:$0xff] }
 0x1ad   : > { %4701 = vmatmul.mubr.msk.bf16.gmra.mrb[84].mxu0 %vm898_vm1, %v6182_v31  ;;  %4805 = vmatmul.mubr.msk.bf16.gmra.mrb[16].mxu1 %vm898_vm1, %v6164_v40 }
 0x1ae   : > { %4704 = vmatprep.mubr.msk.bf16.mxu0 %vm898_vm1, %v6198_v37  ;;  %4808 = vmatprep.mubr.msk.bf16.mxu1 %vm898_vm1, %v6180_v30 }
 0x1b5   : > { %4705 = vmatmul.mubr.msk.bf16.gmra.mrb[88].mxu0 %vm898_vm1, %v6214_v1  ;;  %4809 = vmatmul.mubr.msk.bf16.gmra.mrb[20].mxu1 %vm898_vm1, %v6196_v11 }
 0x1b6   : > { %4708 = vmatprep.mubr.msk.bf16.mxu0 %vm898_vm1, %v6230_v41  ;;  %4812 = vmatprep.mubr.msk.bf16.mxu1 %vm898_vm1, %v6212_v7 }
 0x1bd   : > { %4709 = vmatmul.mubr.msk.bf16.gmra.mrb[92].mxu0 %vm898_vm1, %v6244_v50  ;;  %4813 = vmatmul.mubr.msk.bf16.gmra.mrb[24].mxu1 %vm898_vm1, %v6228_v21 }
 0x1be   : > { %4816 = vmatprep.mubr.msk.bf16.mxu1 %vm898_vm1, %v6242_v27  ;;  %4716 = vmatprep.mubr.msk.bf16.mxu0 %vm898_vm1, %v1566_v53  ;;  %v1551_v53 = vld [vmem:[#allocation2 + $0xca] sm:$0xff] }
 0x1bf   : > { %v6372_v54 = vpack.c.bf16 %v1551_v53, %v1550_v51  ;;  %v6406_v51 = vpack.c.bf16 %v1561_v42, %v1560_v16  ;;  %v2762_v42 = vld [vmem:[#allocation2 + $0x50] sm:$0xff] }
 0x1c5   : > { %4717 = vmatmul.mubr.msk.bf16.vlgmr.msra.gmra.mrb[64].mxu0 %vm898_vm1, %v1567_v60  ;;  %4817 = vmatmul.mubr.msk.bf16.gmra.mrb[28].mxu1 %vm898_vm1, %v6327_v2 }
 0x1c6   : > { %4720 = vmatprep.mubr.msk.bf16.mxu0 %vm898_vm1, %v6329_v35  ;;  %4824 = vmatprep.mubr.msk.bf16.mxu1 %vm898_vm1, %v1567_v60  ;;  %v6382_v60 = vpack.c.bf16 %v1553_v29, %v1552_v55  ;;  %v1564_v55 = vld [vmem:[#allocation2 + $0x16a] sm:$0xff]  ;;  %v1565_v29 = vld [vmem:[#allocation2 + $0x172] sm:$0xff] }
 0x1c7   : > { %v6418_v32 = vpack.c.bf16 %v1565_v29, %v1564_v55  ;;  %v2763_v29 = vld [vmem:[#allocation2 + $0x60] sm:$0xff] }
 0x1cd   : > { %4721 = vmatmul.mubr.msk.bf16.gmra.mrb[68].mxu0 %vm898_vm1, %v6337_v0  ;;  %4825 = vmatmul.mubr.msk.bf16.vlgmr.msra.gmra.mrb[0].mxu1 %vm898_vm1, %v6329_v35 }
 0x1ce   : > { %4857 = vmatpush3.bf16.msra.mxu1 %v5332_v15  ;;  %4724 = vmatprep.mubr.msk.bf16.mxu0 %vm898_vm1, %v6342_v43  ;;  %v1548_v15 = vld [vmem:[#allocation2 + $0xaa] sm:$0xff] }
 0x1cf   : > { %4828 = vmatprep.mubr.msk.bf16.mxu1 %vm898_vm1, %v6337_v0  ;;  %4858 = vmatprep.subr.bf16.mxu1 %v5333_v9  ;;  %v6370_v63 = vpack.c.bf16 %v1549_v18, %v1548_v15  ;;  %v1562_v15 = vld [vmem:[#allocation2 + $0x152] sm:$0xff]  ;;  %v1563_v18 = vld [vmem:[#allocation2 + $0x15a] sm:$0xff] }
 0x1d0   : > { %v6408_v53 = vpack.c.bf16 %v1563_v18, %v1562_v15  ;;  %v2764_v15 = vld [vmem:[#allocation2 + $0x68] sm:$0xff] }
 0x1d1   : > { %v2761_v18 = vld [vmem:[#allocation2 + $0x48] sm:$0xff]  ;;  %v2793_v13 = vpack.c.bf16 %v2764_v15, %v2763_v29 }
 0x1d2   : > { %4859 = vmatpush3.bf16.msra.mxu1 %v5333_v9  ;;  %v1559_v9 = vld [vmem:[#allocation2 + $0x12a] sm:$0xff]  ;;  %v2792_v55 = vpack.c.bf16 %v2762_v42, %v2761_v18 }
 0x1d3   : > { %4892 = vmatprep.subr.bf16.mxu1 %v6355_v47  ;;  %v6396_v58 = vpack.c.bf16 %v1559_v9, %v1558_v57  ;;  %v6426_v57 = vpack.c.bf16 %v2483_v5, %v2482_v23  ;;  %v2759_v9 = vld [vmem:[#allocation2 + $0x30] sm:$0xff]  ;;  %v5336_v23 = vld [vmem:[%s6830_s5 + $0x80] sm:$0xff]   ;;  %v5339_v42 = vld [vmem:[%s6832_s7 + $0x8] sm:$0xff]  }
 0x1d4   : > { %v2791_v16 = vpack.c.bf16 %v2760_v10, %v2759_v9  ;;  %v3071_v5 = vld [vmem:[#allocation2 + $0x79] sm:$0xff]  ;;  %v3073_v9 = vld [vmem:[#allocation2 + $0x91] sm:$0xff]  ;;  %v3078_v29 = vld [vmem:[#allocation2 + $0xc9] sm:$0xff] }
 0x1d5   : > { %4725 = vmatmul.mubr.msk.bf16.gmra.mrb[72].mxu0 %vm898_vm1, %v6357_v56  ;;  %4829 = vmatmul.mubr.msk.bf16.gmra.mrb[4].mxu1 %vm898_vm1, %v6342_v43  ;;  %v5340_v18 = vld [vmem:[%s6832_s7 + $0x10] sm:$0xff]  }
 0x1d6   : > { %4728 = vmatprep.mubr.msk.bf16.mxu0 %vm898_vm1, %v6360_v3  ;;  %4832 = vmatprep.mubr.msk.bf16.mxu1 %vm898_vm1, %v6357_v56 }
 0x1dd   : > { %4729 = vmatmul.mubr.msk.bf16.gmra.mrb[76].mxu0 %vm898_vm1, %v6370_v63  ;;  %4833 = vmatmul.mubr.msk.bf16.gmra.mrb[8].mxu1 %vm898_vm1, %v6360_v3 }
 0x1de   : > { %4732 = vmatprep.mubr.msk.bf16.mxu0 %vm898_vm1, %v6372_v54  ;;  %4836 = vmatprep.mubr.msk.bf16.mxu1 %vm898_vm1, %v6370_v63 }
 0x1e5   : > { %4733 = vmatmul.mubr.msk.bf16.gmra.mrb[80].mxu0 %vm898_vm1, %v6382_v60  ;;  %4837 = vmatmul.mubr.msk.bf16.gmra.mrb[12].mxu1 %vm898_vm1, %v6372_v54 }
 0x1e6   : > { %4736 = vmatprep.mubr.msk.bf16.mxu0 %vm898_vm1, %v6384_v34  ;;  %4840 = vmatprep.mubr.msk.bf16.mxu1 %vm898_vm1, %v6382_v60 }
 0x1ed   : > { %4737 = vmatmul.mubr.msk.bf16.gmra.mrb[84].mxu0 %vm898_vm1, %v6394_v61  ;;  %4841 = vmatmul.mubr.msk.bf16.gmra.mrb[16].mxu1 %vm898_vm1, %v6384_v34 }
 0x1ee   : > { %4740 = vmatprep.mubr.msk.bf16.mxu0 %vm898_vm1, %v6396_v58  ;;  %4844 = vmatprep.mubr.msk.bf16.mxu1 %vm898_vm1, %v6394_v61 }
 0x1f5   : > { %4741 = vmatmul.mubr.msk.bf16.gmra.mrb[88].mxu0 %vm898_vm1, %v6406_v51  ;;  %4845 = vmatmul.mubr.msk.bf16.gmra.mrb[20].mxu1 %vm898_vm1, %v6396_v58 }
 0x1f6   : > { %4744 = vmatprep.mubr.msk.bf16.mxu0 %vm898_vm1, %v6408_v53  ;;  %4848 = vmatprep.mubr.msk.bf16.mxu1 %vm898_vm1, %v6406_v51 }
 0x1fd   : > { %4745 = vmatmul.mubr.msk.bf16.gmra.mrb[92].mxu0 %vm898_vm1, %v6418_v32  ;;  %4849 = vmatmul.mubr.msk.bf16.gmra.mrb[24].mxu1 %vm898_vm1, %v6408_v53 }
 0x1fe   : > { %4852 = vmatprep.mubr.msk.bf16.mxu1 %vm898_vm1, %v6418_v32 }
 0x205   : > { %4853 = vmatmul.mubr.msk.bf16.gmra.mrb[28].mxu1 %vm898_vm1, %v6426_v57 }
 0x206   : > { %4860 = vmatprep.mubr.msk.bf16.mxu1 %vm898_vm1, %v2791_v16  ;;  %v5338_v16 = vld [vmem:[%s6832_s7] sm:$0xff]  }
 0x207   : > { %4964 = vmatprep.subr.bf16.mxu0 %v5338_v16 }
 0x208   : > { %4965 = vmatpush3.bf16.msra.mxu0 %v5338_v16 }
 0x209   : > { %4966 = vmatprep.subr.bf16.mxu0 %v5339_v42 }
 0x20c   : > { %4967 = vmatpush3.bf16.msra.mxu0 %v5339_v42 }
 0x20d   : > { %4861 = vmatmul.mubr.msk.bf16.vlgmr.msra.gmra.mrb[0].mxu1 %vm898_vm1, %v2792_v55  ;;  %v3076_v55 = vld [vmem:[#allocation2 + $0xb1] sm:$0xff]  ;;  %4968 = vmatprep.subr.bf16.mxu0 %v5340_v18 }
 0x20e   : > { %4893 = vmatpush3.bf16.msra.mxu1 %v6355_v47  ;;  %4864 = vmatprep.mubr.msk.bf16.mxu1 %vm898_vm1, %v2793_v13  ;;  %v3074_v47 = vld [vmem:[#allocation2 + $0x99] sm:$0xff] }
 0x20f   : > { %4894 = vmatprep.subr.bf16.mxu1 %v5335_v46  ;;  %v3101_v15 = vpack.c.bf16 %v3074_v47, %v3073_v9 }
 0x210   : > { %4969 = vmatpush3.bf16.msra.mxu0 %v5340_v18 }
 0x212   : > { %4895 = vmatpush3.bf16.msra.mxu1 %v5335_v46 }
 0x213   : > { %4928 = vmatprep.subr.bf16.mxu1 %v5336_v23 }
 0x215   : > { %4865 = vmatmul.mubr.msk.bf16.gmra.mrb[4].mxu1 %vm898_vm1, %v6080_v24  ;;  %v2789_v24 = vld [vmem:[#allocation2 + $0x198] sm:$0xff] }
 0x216   : > { %4868 = vmatprep.mubr.msk.bf16.mxu1 %vm898_vm1, %v6096_v62  ;;  %v2790_v62 = vld [vmem:[#allocation2 + $0x1a0] sm:$0xff] }
 0x217   : > { %v2806_v13 = vpack.c.bf16 %v2790_v62, %v2789_v24  ;;  %v3077_v62 = vld [vmem:[#allocation2 + $0xc1] sm:$0xff] }
 0x21d   : > { %4869 = vmatmul.mubr.msk.bf16.gmra.mrb[8].mxu1 %vm898_vm1, %v6112_v20  ;;  %v3066_v20 = vld [vmem:[#allocation2 + $0x39] sm:$0xff] }
 0x21e   : > { %4872 = vmatprep.mubr.msk.bf16.mxu1 %vm898_vm1, %v6134_v39  ;;  %v3065_v39 = vld [vmem:[#allocation2 + $0x31] sm:$0xff] }
 0x21f   : > { %v3097_v46 = vpack.c.bf16 %v3066_v20, %v3065_v39  ;;  %v3103_v20 = vpack.c.bf16 %v3078_v29, %v3077_v62  ;;  %v3080_v39 = vld [vmem:[#allocation2 + $0xe1] sm:$0xff] }
 0x225   : > { %4873 = vmatmul.mubr.msk.bf16.gmra.mrb[12].mxu1 %vm898_vm1, %v6150_v6  ;;  %v3068_v6 = vld [vmem:[#allocation2 + $0x51] sm:$0xff] }
 0x226   : > { %4876 = vmatprep.mubr.msk.bf16.mxu1 %vm898_vm1, %v6166_v45  ;;  %v3070_v45 = vld [vmem:[#allocation2 + $0x69] sm:$0xff] }
 0x22d   : > { %4877 = vmatmul.mubr.msk.bf16.gmra.mrb[16].mxu1 %vm898_vm1, %v6182_v31 }
 0x22e   : > { %4880 = vmatprep.mubr.msk.bf16.mxu1 %vm898_vm1, %v6198_v37  ;;  %v3069_v37 = vld [vmem:[#allocation2 + $0x61] sm:$0xff] }
 0x235   : > { %4881 = vmatmul.mubr.msk.bf16.gmra.mrb[20].mxu1 %vm898_vm1, %v6214_v1  ;;  %v3067_v1 = vld [vmem:[#allocation2 + $0x49] sm:$0xff] }
 0x236   : > { %4884 = vmatprep.mubr.msk.bf16.mxu1 %vm898_vm1, %v6230_v41  ;;  %v3098_v31 = vpack.c.bf16 %v3068_v6, %v3067_v1  ;;  %v3099_v41 = vpack.c.bf16 %v3070_v45, %v3069_v37  ;;  %v3095_v45 = vld [vmem:[#allocation2 + $0x199] sm:$0xff] }
 0x23d   : > { %4885 = vmatmul.mubr.msk.bf16.gmra.mrb[24].mxu1 %vm898_vm1, %v6244_v50  ;;  %v5337_v50 = vld [vmem:[%s6830_s5 + $0x88] sm:$0xff]  }
 0x23e   : > { %4888 = vmatprep.mubr.msk.bf16.mxu1 %vm898_vm1, %v6251_v12  ;;  %v3072_v12 = vld [vmem:[#allocation2 + $0x81] sm:$0xff] }
 0x23f   : > { %v3100_v10 = vpack.c.bf16 %v3072_v12, %v3071_v5  ;;  %v3402_v12 = vld [vmem:[#allocation2 + $0x1a2] sm:$0xff] }
 0x245   : > { %4889 = vmatmul.mubr.msk.bf16.gmra.mrb[28].mxu1 %vm898_vm1, %v2806_v13  ;;  %v5341_v13 = vld [vmem:[%s6832_s7 + $0x18] sm:$0xff]  }
 0x246   : > { %4896 = vmatprep.mubr.msk.bf16.mxu1 %vm898_vm1, %v3097_v46  ;;  %4970 = vmatprep.subr.bf16.mxu0 %v5341_v13  ;;  %v3079_v46 = vld [vmem:[#allocation2 + $0xd9] sm:$0xff] }
 0x247   : > { %4971 = vmatpush3.bf16.msra.mxu0 %v5341_v13  ;;  %v3104_v6 = vpack.c.bf16 %v3080_v39, %v3079_v46 }
 0x24d   : > { %4897 = vmatmul.mubr.msk.bf16.vlgmr.msra.gmra.mrb[0].mxu1 %vm898_vm1, %v3098_v31 }
 0x24e   : > { %4929 = vmatpush3.bf16.msra.mxu1 %v5336_v23  ;;  %4900 = vmatprep.mubr.msk.bf16.mxu1 %vm898_vm1, %v3099_v41  ;;  %v3075_v23 = vld [vmem:[#allocation2 + $0xa9] sm:$0xff]  ;;  %v3401_v41 = vld [vmem:[#allocation2 + $0x19a] sm:$0xff] }
 0x24f   : > { %4930 = vmatprep.subr.bf16.mxu1 %v5337_v50  ;;  %v3102_v24 = vpack.c.bf16 %v3076_v55, %v3075_v23  ;;  %v6589_v23 = vld [vmem:[%s6831_s6] ss:$0 sm:$0xff] }
 0x252   : > { %4931 = vmatpush3.bf16.msra.mxu1 %v5337_v50 }
 0x255   : > { %4901 = vmatmul.mubr.msk.bf16.gmra.mrb[4].mxu1 %vm898_vm1, %v3100_v10 }
 0x256   : > { %4904 = vmatprep.mubr.msk.bf16.mxu1 %vm898_vm1, %v3101_v15 }
 0x25d   : > { %4905 = vmatmul.mubr.msk.bf16.gmra.mrb[8].mxu1 %vm898_vm1, %v3102_v24 }
 0x25e   : > { %4908 = vmatprep.mubr.msk.bf16.mxu1 %vm898_vm1, %v3103_v20 }
 0x265   : > { %4909 = vmatmul.mubr.msk.bf16.gmra.mrb[12].mxu1 %vm898_vm1, %v3104_v6 }
 0x266   : > { %4912 = vmatprep.mubr.msk.bf16.mxu1 %vm898_vm1, %v6164_v40  ;;  %v3096_v40 = vld [vmem:[#allocation2 + $0x1a1] sm:$0xff] }
 0x267   : > { %v3112_v1 = vpack.c.bf16 %v3096_v40, %v3095_v45 }
 0x26d   : > { %4913 = vmatmul.mubr.msk.bf16.gmra.mrb[16].mxu1 %vm898_vm1, %v6180_v30 }
 0x26e   : > { %4916 = vmatprep.mubr.msk.bf16.mxu1 %vm898_vm1, %v6196_v11 }
 0x275   : > { %4917 = vmatmul.mubr.msk.bf16.gmra.mrb[20].mxu1 %vm898_vm1, %v6212_v7 }
 0x276   : > { %4920 = vmatprep.mubr.msk.bf16.mxu1 %vm898_vm1, %v6228_v21 }
 0x27d   : > { %4921 = vmatmul.mubr.msk.bf16.gmra.mrb[24].mxu1 %vm898_vm1, %v6242_v27 }
 0x27e   : > { %4924 = vmatprep.mubr.msk.bf16.mxu1 %vm898_vm1, %v6327_v2 }
 0x285   : > { %4925 = vmatmul.mubr.msk.bf16.gmra.mrb[28].mxu1 %vm898_vm1, %v3112_v1 }
 0x286   : > { %4932 = vmatprep.mubr.msk.bf16.mxu1 %vm898_vm1, %v6329_v35 }
 0x28d   : > { %4933 = vmatmul.mubr.msk.bf16.vlgmr.msra.gmra.mrb[0].mxu1 %vm898_vm1, %v6337_v0 }
 0x28e   : > { %4936 = vmatprep.mubr.msk.bf16.mxu1 %vm898_vm1, %v6342_v43 }
 0x295   : > { %4937 = vmatmul.mubr.msk.bf16.gmra.mrb[4].mxu1 %vm898_vm1, %v6357_v56 }
 0x296   : > { %4940 = vmatprep.mubr.msk.bf16.mxu1 %vm898_vm1, %v6360_v3 }
 0x298   : > { %v4718_v21 = vpop.f32.mrb[64].mxu0 }
 0x299   : > { %v1681_v27 = vpop.f32.mrb[65].mxu0 }
 0x29a   : > { %v4719_v30 = vpop.f32.mrb[66].mxu0 }
 0x29b   : > { %v1684_v7 = vpop.f32.mrb[67].mxu0 }
 0x29d   : > { %4941 = vmatmul.mubr.msk.bf16.gmra.mrb[8].mxu1 %vm898_vm1, %v6370_v63 }
 0x29e   : > { %4944 = vmatprep.mubr.msk.bf16.mxu1 %vm898_vm1, %v6372_v54 }
 0x2a0   : > { %v4722_v11 = vpop.f32.mrb[68].mxu0 }
 0x2a1   : > { %v1697_v2 = vpop.f32.mrb[69].mxu0 }
 0x2a2   : > { %v6517_v35 = vpop.f32.mrb[70].mxu0 }
 0x2a3   : > { %v6519_v0 = vpop.f32.mrb[71].mxu0 }
 0x2a5   : > { %4945 = vmatmul.mubr.msk.bf16.gmra.mrb[12].mxu1 %vm898_vm1, %v6382_v60 }
 0x2a6   : > { %4948 = vmatprep.mubr.msk.bf16.mxu1 %vm898_vm1, %v6384_v34 }
 0x2a8   : > { %v6525_v43 = vpop.f32.mrb[72].mxu0 }
 0x2a9   : > { %v6527_v56 = vpop.f32.mrb[73].mxu0 }
 0x2aa   : > { %v6529_v3 = vpop.f32.mrb[74].mxu0 }
 0x2ab   : > { %v6531_v63 = vpop.f32.mrb[75].mxu0 }
 0x2ad   : > { %4949 = vmatmul.mubr.msk.bf16.gmra.mrb[16].mxu1 %vm898_vm1, %v6394_v61 }
 0x2ae   : > { %4952 = vmatprep.mubr.msk.bf16.mxu1 %vm898_vm1, %v6396_v58 }
 0x2b0   : > { %v6537_v54 = vpop.f32.mrb[76].mxu0 }
 0x2b1   : > { %v6539_v60 = vpop.f32.mrb[77].mxu0 }
 0x2b2   : > { %v6541_v31 = vpop.f32.mrb[78].mxu0 }
 0x2b3   : > { %v6543_v34 = vpop.f32.mrb[79].mxu0 }
 0x2b5   : > { %4953 = vmatmul.mubr.msk.bf16.gmra.mrb[20].mxu1 %vm898_vm1, %v6406_v51 }
 0x2b6   : > { %4956 = vmatprep.mubr.msk.bf16.mxu1 %vm898_vm1, %v6408_v53  ;;  %v3418_v53 = vpack.c.bf16 %v3402_v12, %v3401_v41 }
 0x2b8   : > { %v6549_v37 = vpop.f32.mrb[80].mxu0 }
 0x2b9   : > { %v6551_v61 = vpop.f32.mrb[81].mxu0 }
 0x2ba   : > { %v6553_v50 = vpop.f32.mrb[82].mxu0 }
 0x2bb   : > { %v6555_v58 = vpop.f32.mrb[83].mxu0 }
 0x2bd   : > { %4957 = vmatmul.mubr.msk.bf16.gmra.mrb[24].mxu1 %vm898_vm1, %v6418_v32 }
 0x2be   : > { %4960 = vmatprep.mubr.msk.bf16.mxu1 %vm898_vm1, %v6426_v57 }
 0x2c0   : > { %v6561_v51 = vpop.f32.mrb[84].mxu0 }
 0x2c1   : > { %v6563_v47 = vpop.f32.mrb[85].mxu0 }
 0x2c2   : > { %v6565_v5 = vpop.f32.mrb[86].mxu0 }
 0x2c3   : > { %v6567_v10 = vpop.f32.mrb[87].mxu0 }
 0x2c5   : > { %4961 = vmatmul.mubr.msk.bf16.gmra.mrb[28].mxu1 %vm898_vm1, %v3418_v53 }
 0x2c8   : > { %v6570_v9 = vpop.f32.mrb[88].mxu0 }
 0x2c9   : > { %v6572_v16 = vpop.f32.mrb[89].mxu0 }
 0x2ca   : > { %v6574_v32 = vpop.f32.mrb[90].mxu0 }
 0x2cb   : > { %v6576_v57 = vpop.f32.mrb[91].mxu0 }
 0x2d0   : > { %v6578_v42 = vpop.f32.mrb[92].mxu0 }
 0x2d1   : > { %v6580_v15 = vpop.f32.mrb[93].mxu0 }
 0x2d2   : > { %v6582_v18 = vpop.f32.mrb[94].mxu0 }
 0x2d3   : > { %v6584_v55 = vpop.f32.mrb[95].mxu0 }
 0x360   : > { %v4934_v29 = vpop.f32.mrb[0].mxu1 }
 0x361   : > { %v5004_v24 = vadd.f32 %v4934_v29, %v4718_v21  ;;  %v3518_v62 = vpop.f32.mrb[1].mxu1 }
 0x362   : > { %v5005_v13 = vadd.f32 %v3518_v62, %v1681_v27  ;;  %v4935_v20 = vpop.f32.mrb[2].mxu1 }
 0x363   : > { %v3686_v39 = vadd.f32 %v5004_v24, %v6589_v23  ;;  %v5006_v46 = vadd.f32 %v4935_v20, %v4719_v30  ;;  %v3521_v6 = vpop.f32.mrb[3].mxu1 }
 0x364   : > { %v3684_v45 = vadd.f32 %v5005_v13, %v6589_v23  ;;  %v5007_v40 = vadd.f32 %v3521_v6, %v1684_v7 }
 0x365   : > { %v3687_v1 = vadd.f32 %v5006_v46, %v6589_v23  ;;  %v3718_v12 = vmax.f32 %v3686_v39, 0.0 }
 0x366   : > { %v3685_v41 = vadd.f32 %v5007_v40, %v6589_v23  ;;  %v3716_v28 = vmax.f32 %v3684_v45, 0.0 }
 0x367   : > { %v3719_v53 = vmax.f32 %v3687_v1, 0.0 }
 0x368   : > { %v3717_v33 = vmax.f32 %v3685_v41, 0.0  ;;  %v4938_v38 = vpop.f32.mrb[4].mxu1 }
 0x369   : > { %v3749_v21 = vpack.c.bf16 %v3719_v53, %v3718_v12  ;;  %v5008_v29 = vadd.f32 %v4938_v38, %v4722_v11  ;;  %v3534_v27 = vpop.f32.mrb[5].mxu1 }
 0x36a   : > { %v3748_v62 = vpack.c.bf16 %v3717_v33, %v3716_v28  ;;  %v5009_v19 = vadd.f32 %v3534_v27, %v1697_v2  ;;  %v4939_v24 = vpop.f32.mrb[6].mxu1 }
 0x36b   : > { %v3690_v30 = vadd.f32 %v5008_v29, %v6589_v23  ;;  %v5010_v13 = vadd.f32 %v4939_v24, %v6517_v35  ;;  %v3537_v7 = vpop.f32.mrb[7].mxu1 }
 0x36c   : > { %v3688_v20 = vadd.f32 %v5009_v19, %v6589_v23  ;;  %v5011_v46 = vadd.f32 %v3537_v7, %v6519_v0  ;;  %4972 = vmatprep.mubr.msk.bf16.mxu0 %vm489_vm0, %v3748_v62 }
 0x36d   : > { %v3691_v39 = vadd.f32 %v5010_v13, %v6589_v23  ;;  %4973 = vmatmul.mubr.msk.bf16.vlgmr.msra.gmra.mrb[96].mxu0 %vm489_vm0, %v3749_v21  ;;  %v3722_v33 = vmax.f32 %v3690_v30, 0.0 }
 0x36e   : > { %v3689_v38 = vadd.f32 %v5011_v46, %v6589_v23  ;;  %v3720_v11 = vmax.f32 %v3688_v20, 0.0 }
 0x36f   : > { %v3723_v28 = vmax.f32 %v3691_v39, 0.0 }
 0x370   : > { %v3721_v2 = vmax.f32 %v3689_v38, 0.0  ;;  %v4942_v6 = vpop.f32.mrb[8].mxu1 }
 0x371   : > { %v3751_v45 = vpack.c.bf16 %v3723_v28, %v3722_v33  ;;  %v5012_v35 = vadd.f32 %v4942_v6, %v6525_v43  ;;  %v3550_v40 = vpop.f32.mrb[9].mxu1 }
 0x372   : > { %v3750_v19 = vpack.c.bf16 %v3721_v2, %v3720_v11  ;;  %v5013_v0 = vadd.f32 %v3550_v40, %v6527_v56  ;;  %v4943_v1 = vpop.f32.mrb[10].mxu1 }
 0x373   : > { %v3694_v41 = vadd.f32 %v5012_v35, %v6589_v23  ;;  %v5014_v12 = vadd.f32 %v4943_v1, %v6529_v3  ;;  %v3553_v53 = vpop.f32.mrb[11].mxu1 }
 0x374   : > { %v3692_v21 = vadd.f32 %v5013_v0, %v6589_v23  ;;  %v5015_v29 = vadd.f32 %v3553_v53, %v6531_v63  ;;  %4976 = vmatprep.mubr.msk.bf16.mxu0 %vm489_vm0, %v3750_v19 }
 0x375   : > { %v3695_v27 = vadd.f32 %v5014_v12, %v6589_v23  ;;  %4977 = vmatmul.mubr.msk.bf16.gmra.mrb[100].mxu0 %vm489_vm0, %v3751_v45  ;;  %v3726_v62 = vmax.f32 %v3694_v41, 0.0 }
 0x376   : > { %v3693_v43 = vadd.f32 %v5015_v29, %v6589_v23  ;;  %v3724_v24 = vmax.f32 %v3692_v21, 0.0 }
 0x377   : > { %v3727_v56 = vmax.f32 %v3695_v27, 0.0 }
 0x378   : > { %v3725_v30 = vmax.f32 %v3693_v43, 0.0  ;;  %v4946_v13 = vpop.f32.mrb[12].mxu1 }
 0x379   : > { %v3753_v7 = vpack.c.bf16 %v3727_v56, %v3726_v62  ;;  %v5016_v3 = vadd.f32 %v4946_v13, %v6537_v54  ;;  %v3566_v20 = vpop.f32.mrb[13].mxu1 }
 0x37a   : > { %v3752_v46 = vpack.c.bf16 %v3725_v30, %v3724_v24  ;;  %v5017_v63 = vadd.f32 %v3566_v20, %v6539_v60  ;;  %v4947_v39 = vpop.f32.mrb[14].mxu1 }
 0x37b   : > { %v3698_v38 = vadd.f32 %v5016_v3, %v6589_v23  ;;  %v5018_v33 = vadd.f32 %v4947_v39, %v6541_v31  ;;  %v3569_v28 = vpop.f32.mrb[15].mxu1 }
 0x37c   : > { %v3696_v11 = vadd.f32 %v5017_v63, %v6589_v23  ;;  %v5019_v2 = vadd.f32 %v3569_v28, %v6543_v34  ;;  %4980 = vmatprep.mubr.msk.bf16.mxu0 %vm489_vm0, %v3752_v46 }
 0x37d   : > { %v3699_v6 = vadd.f32 %v5018_v33, %v6589_v23  ;;  %4981 = vmatmul.mubr.msk.bf16.gmra.mrb[104].mxu0 %vm489_vm0, %v3753_v7  ;;  %v3730_v45 = vmax.f32 %v3698_v38, 0.0 }
 0x37e   : > { %v3697_v54 = vadd.f32 %v5019_v2, %v6589_v23  ;;  %v3728_v35 = vmax.f32 %v3696_v11, 0.0 }
 0x37f   : > { %v3731_v60 = vmax.f32 %v3699_v6, 0.0 }
 0x380   : > { %v3729_v40 = vmax.f32 %v3697_v54, 0.0  ;;  %v4950_v19 = vpop.f32.mrb[16].mxu1 }
 0x381   : > { %v3755_v0 = vpack.c.bf16 %v3731_v60, %v3730_v45  ;;  %v5020_v31 = vadd.f32 %v4950_v19, %v6549_v37  ;;  %v3582_v1 = vpop.f32.mrb[17].mxu1 }
 0x382   : > { %v3754_v41 = vpack.c.bf16 %v3729_v40, %v3728_v35  ;;  %v5021_v34 = vadd.f32 %v3582_v1, %v6551_v61  ;;  %v4951_v12 = vpop.f32.mrb[18].mxu1 }
 0x383   : > { %v3702_v53 = vadd.f32 %v5020_v31, %v6589_v23  ;;  %v5022_v21 = vadd.f32 %v4951_v12, %v6553_v50  ;;  %v3585_v29 = vpop.f32.mrb[19].mxu1 }
 0x384   : > { %v3700_v27 = vadd.f32 %v5021_v34, %v6589_v23  ;;  %v5023_v43 = vadd.f32 %v3585_v29, %v6555_v58  ;;  %4984 = vmatprep.mubr.msk.bf16.mxu0 %vm489_vm0, %v3754_v41 }
 0x385   : > { %v3703_v62 = vadd.f32 %v5022_v21, %v6589_v23  ;;  %4985 = vmatmul.mubr.msk.bf16.gmra.mrb[108].mxu0 %vm489_vm0, %v3755_v0  ;;  %v3734_v56 = vmax.f32 %v3702_v53, 0.0 }
 0x386   : > { %v3701_v37 = vadd.f32 %v5023_v43, %v6589_v23  ;;  %v3732_v24 = vmax.f32 %v3700_v27, 0.0 }
 0x387   : > { %v3735_v61 = vmax.f32 %v3703_v62, 0.0 }
 0x388   : > { %v3733_v30 = vmax.f32 %v3701_v37, 0.0  ;;  %v4954_v13 = vpop.f32.mrb[20].mxu1 }
 0x389   : > { %v3757_v7 = vpack.c.bf16 %v3735_v61, %v3734_v56  ;;  %v5024_v50 = vadd.f32 %v4954_v13, %v6561_v51  ;;  %v3598_v3 = vpop.f32.mrb[21].mxu1 }
 0x38a   : > { %v3756_v20 = vpack.c.bf16 %v3733_v30, %v3732_v24  ;;  %v5025_v58 = vadd.f32 %v3598_v3, %v6563_v47  ;;  %v4955_v46 = vpop.f32.mrb[22].mxu1 }
 0x38b   : > { %v3706_v63 = vadd.f32 %v5024_v50, %v6589_v23  ;;  %v5026_v39 = vadd.f32 %v4955_v46, %v6565_v5  ;;  %v3601_v38 = vpop.f32.mrb[23].mxu1 }
 0x38c   : > { %v3704_v33 = vadd.f32 %v5025_v58, %v6589_v23  ;;  %v5027_v28 = vadd.f32 %v3601_v38, %v6567_v10  ;;  %4988 = vmatprep.mubr.msk.bf16.mxu0 %vm489_vm0, %v3756_v20 }
 0x38d   : > { %v3707_v11 = vadd.f32 %v5026_v39, %v6589_v23  ;;  %4989 = vmatmul.mubr.msk.bf16.gmra.mrb[112].mxu0 %vm489_vm0, %v3757_v7  ;;  %v3738_v2 = vmax.f32 %v3706_v63, 0.0 }
 0x38e   : > { %v3705_v51 = vadd.f32 %v5027_v28, %v6589_v23  ;;  %v3736_v6 = vmax.f32 %v3704_v33, 0.0 }
 0x38f   : > { %v3739_v47 = vmax.f32 %v3707_v11, 0.0 }
 0x390   : > { %v3737_v54 = vmax.f32 %v3705_v51, 0.0  ;;  %v4958_v45 = vpop.f32.mrb[24].mxu1 }
 0x391   : > { %v3759_v60 = vpack.c.bf16 %v3739_v47, %v3738_v2  ;;  %v5028_v5 = vadd.f32 %v4958_v45, %v6570_v9  ;;  %v3614_v35 = vpop.f32.mrb[25].mxu1 }
 0x392   : > { %v3758_v40 = vpack.c.bf16 %v3737_v54, %v3736_v6  ;;  %v5029_v10 = vadd.f32 %v3614_v35, %v6572_v16  ;;  %v4959_v19 = vpop.f32.mrb[26].mxu1 }
 0x393   : > { %v3710_v0 = vadd.f32 %v5028_v5, %v6589_v23  ;;  %v5030_v31 = vadd.f32 %v4959_v19, %v6574_v32  ;;  %v3617_v1 = vpop.f32.mrb[27].mxu1 }
 0x394   : > { %v3708_v41 = vadd.f32 %v5029_v10, %v6589_v23  ;;  %v5031_v34 = vadd.f32 %v3617_v1, %v6576_v57  ;;  %4992 = vmatprep.mubr.msk.bf16.mxu0 %vm489_vm0, %v3758_v40 }
 0x395   : > { %v3711_v12 = vadd.f32 %v5030_v31, %v6589_v23  ;;  %4993 = vmatmul.mubr.msk.bf16.gmra.mrb[116].mxu0 %vm489_vm0, %v3759_v60  ;;  %v3742_v53 = vmax.f32 %v3710_v0, 0.0 }
 0x396   : > { %v3709_v9 = vadd.f32 %v5031_v34, %v6589_v23  ;;  %v3740_v21 = vmax.f32 %v3708_v41, 0.0 }
 0x397   : > { %v3743_v16 = vmax.f32 %v3711_v12, 0.0 }
 0x398   : > { %v3741_v29 = vmax.f32 %v3709_v9, 0.0  ;;  %v4962_v27 = vpop.f32.mrb[28].mxu1 }
 0x399   : > { %v3761_v43 = vpack.c.bf16 %v3743_v16, %v3742_v53  ;;  %v5032_v32 = vadd.f32 %v4962_v27, %v6578_v42  ;;  %v3630_v62 = vpop.f32.mrb[29].mxu1 }
 0x39a   : > { %v3760_v37 = vpack.c.bf16 %v3741_v29, %v3740_v21  ;;  %v5033_v57 = vadd.f32 %v3630_v62, %v6580_v15  ;;  %v4963_v56 = vpop.f32.mrb[30].mxu1 }
 0x39b   : > { %v3714_v61 = vadd.f32 %v5032_v32, %v6589_v23  ;;  %v5034_v24 = vadd.f32 %v4963_v56, %v6582_v18  ;;  %v3633_v30 = vpop.f32.mrb[31].mxu1 }
 0x39c   : > { %v3712_v13 = vadd.f32 %v5033_v57, %v6589_v23  ;;  %v5035_v7 = vadd.f32 %v3633_v30, %v6584_v55  ;;  %4996 = vmatprep.mubr.msk.bf16.mxu0 %vm489_vm0, %v3760_v37 }
 0x39d   : > { %v3715_v42 = vadd.f32 %v5034_v24, %v6589_v23  ;;  %4997 = vmatmul.mubr.msk.bf16.gmra.mrb[120].mxu0 %vm489_vm0, %v3761_v43  ;;  %v3746_v50 = vmax.f32 %v3714_v61, 0.0 }
 0x39e   : > { %v3713_v15 = vadd.f32 %v5035_v7, %v6589_v23  ;;  %v3744_v3 = vmax.f32 %v3712_v13, 0.0 }
 0x39f   : > { %v3747_v18 = vmax.f32 %v3715_v42, 0.0 }
 0x3a0   : > { %v3745_v20 = vmax.f32 %v3713_v15, 0.0 }
 0x3a1   : > { %v3763_v58 = vpack.c.bf16 %v3747_v18, %v3746_v50 }
 0x3a2   : > { %v3762_v46 = vpack.c.bf16 %v3745_v20, %v3744_v3 }
 0x3a4   : > { %5000 = vmatprep.mubr.msk.bf16.mxu0 %vm489_vm0, %v3762_v46 }
 0x3a5   : > { %5001 = vmatmul.mubr.msk.bf16.gmra.mrb[124].mxu0 %vm489_vm0, %v3763_v58 }
 0x3a6   : > { %5355 = shalt.err (!%p5352_p3)
}
 0x3a7   : > { %s5356_s24 = scalar_lea.hbm %s6671_s17, 4096  ;;  %s5360_s27 = scalar_lea.hbm %s6833_s8, 8192 }
 0x3a8   : > { %p5357_p4 = scmp.ne.s32.totalorder %s6671_s17, %s5356_s24  ;;  %p5361_p9 = scmp.lt.u32.totalorder %s6671_s17, %s6833_s8 }
 0x3a9   : > { %p5362_p10 = scmp.lt.u32.totalorder %s5360_s27, %s5356_s24  ;;  %p5364_p12 = scmp.lt.u32.totalorder %s5356_s24, %s6671_s17 }
 0x3aa   : > { %p5358_p7 = pnand %p5357_p4, %p5532_p5 }
 0x3ab   : > { %p5363_p11 = por %p5362_p10, %p5361_p9 }
 0x3ac   : > { %p5359_p8 = pneg %p5358_p7 }
 0x3ad   : > { %p5365_p13 = por %p5364_p12, %p5363_p11 }
 0x3af   : > { %p5366_p0 = pnand %p5365_p13, %p5359_p8 }
 0x3b1   : > { %5369 = shalt.err (!%p5366_p0)
}
 0x3b2   : > { %s6837_s23 = smov 128   ;;  %s5442_s26 = smov 8   ;;  %v6860_v10 = vld [vmem:[#allocation9_spill] sm:$0xff]  ;;  %v6861_v0 = vld [vmem:[#allocation11_spill] sm:$0xff]  ;;  %v6862_v1 = vld [vmem:[#allocation10_spill] sm:$0xff] }
 0x3b3   : > { %5260 = dma.vmem_to_hbm [thread:$0]  (%p5532_p5), %s6674_s25, 4096, %s6671_s17, %s4070_s22, %s6837_s23, %s6837_s23, %s5442_s26   ;;  %v6863_v34 = vld [vmem:[#allocation14_spill] sm:$0xff]  ;;  %v6864_v9 = vld [vmem:[#allocation12_spill] sm:$0xff]  ;;  %v6865_v21 = vld [vmem:[#allocation15_spill] sm:$0xff] }
 0x3b4   : > { %s6859_s29 = sshll.u32 %s5581_s21, 8  ;;  %v6866_v43 = vld [vmem:[#allocation13_spill] sm:$0xff]  ;;  %v6867_v37 = vld [vmem:[#allocation18_spill] sm:$0xff]  ;;  %v6868_v61 = vld [vmem:[#allocation16_spill] sm:$0xff]  ;;  %s6879_s25 = sshll.u32 %s5515_s13, 12 }
 0x3b5   : > { %s6707_s24 = scalar_lea.vmem [#allocation5], %s6859_s29  ;;  %v6869_v13 = vld [vmem:[#allocation19_spill] sm:$0xff]  ;;  %v6870_v15 = vld [vmem:[#allocation17_spill] sm:$0xff]  ;;  %v6871_v3 = vld [vmem:[#allocation22_spill] sm:$0xff]  ;;  %s6775_s16 = scalar_lea.hbm %s6834_s9, %s6879_s25 }
 0x3b6   : > { %v6872_v46 = vld [vmem:[#allocation20_spill] sm:$0xff]  ;;  %s4104_s17 = sshll.u32 %s6707_s24, 4  ;;  %s4075_s27 = scalar_lea.sflag [#allocation6], %s5581_s21  ;;  %s6777_s17 = int_to_ptr.vmem [resolvable:$true] %s4104_s17 }
 0x3b7   : > { %s5370_s28 = scalar_lea.vmem %s6777_s17, 4096  ;;  %s5443_s29 = smov [#allocation5]  }
 0x3b8   : > { %p5371_p1 = scmp.ne.s32.totalorder %s6777_s17, %s5370_s28  ;;  %s5374_s13 = sshll.u32 %s5443_s29, 4  ;;  %s5375_s13 = int_to_ptr.vmem [resolvable:$false] %s5374_s13 }
 0x3b9   : > { %s5376_s23 = scalar_lea.vmem %s5375_s13, 8192  ;;  %p5377_p4 = scmp.lt.s32.totalorder %s6777_s17, %s5375_s13 }
 0x3ba   : > { %p5372_p2 = pnand %p5371_p1, %p5532_p5  ;;  %p5378_p7 = scmp.lt.s32.totalorder %s5376_s23, %s5370_s28 }
 0x3bc   : > { %p5373_p3 = pneg %p5372_p2  ;;  %p5379_p8 = por %p5378_p7, %p5377_p4 }
 0x3be   : > { %p5380_p9 = pnand %p5379_p8, %p5373_p3 }
 0x440   : > { %v4974_v55 = vpop.f32.mrb[96].mxu0 }
 0x441   : > { %v4007_v23 = vadd.f32 %v4974_v55, %v5992_v36  ;;  %v3878_v63 = vpop.f32.mrb[97].mxu0 }
 0x442   : > { %v4005_v39 = vadd.f32 %v3878_v63, %v5981_v17  ;;  %v4975_v38 = vpop.f32.mrb[98].mxu0  ;;  %v6873_v63 = vld [vmem:[#allocation23_spill] sm:$0xff] }
 0x443   : > { %4039 = vst [vmem:[%s6707_s24 + $0x10] sm:$0xff] %v4007_v23  ;;  %v4008_v33 = vadd.f32 %v4975_v38, %v5995_v49  ;;  %v3881_v28 = vpop.f32.mrb[99].mxu0 }
 0x444   : > { %4037 = vst [vmem:[%s6707_s24] sm:$0xff] %v4005_v39  ;;  %v4006_v36 = vadd.f32 %v3881_v28, %v5987_v22 }
 0x445   : > { %4040 = vst [vmem:[%s6707_s24 + $0x18] sm:$0xff] %v4008_v33  ;;  %v6874_v33 = vld [vmem:[#allocation21_spill] sm:$0xff] }
 0x446   : > { %4038 = vst [vmem:[%s6707_s24 + $0x8] sm:$0xff] %v4006_v36 }
 0x448   : > { %v4978_v17 = vpop.f32.mrb[100].mxu0 }
 0x449   : > { %v4011_v11 = vadd.f32 %v4978_v17, %v6019_v48  ;;  %v3894_v51 = vpop.f32.mrb[101].mxu0  ;;  %v6875_v17 = vld [vmem:[#allocation26_spill] sm:$0xff] }
 0x44a   : > { %v4009_v2 = vadd.f32 %v3894_v51, %v6000_v14  ;;  %v4979_v47 = vpop.f32.mrb[102].mxu0 }
 0x44b   : > { %4043 = vst [vmem:[%s6707_s24 + $0x30] sm:$0xff] %v4011_v11  ;;  %v4012_v49 = vadd.f32 %v4979_v47, %v6029_v59  ;;  %v3897_v6 = vpop.f32.mrb[103].mxu0 }
 0x44c   : > { %4041 = vst [vmem:[%s6707_s24 + $0x20] sm:$0xff] %v4009_v2  ;;  %v4010_v22 = vadd.f32 %v3897_v6, %v6010_v26  ;;  %v6876_v2 = vld [vmem:[#allocation24_spill] sm:$0xff]  ;;  %v6877_v6 = vld [vmem:[#allocation27_spill] sm:$0xff] }
 0x44d   : > { %4044 = vst [vmem:[%s6707_s24 + $0x38] sm:$0xff] %v4012_v49 }
 0x44e   : > { %4042 = vst [vmem:[%s6707_s24 + $0x28] sm:$0xff] %v4010_v22 }
 0x450   : > { %v4982_v54 = vpop.f32.mrb[104].mxu0 }
 0x451   : > { %v4015_v48 = vadd.f32 %v4982_v54, %v6060_v25  ;;  %v3910_v45 = vpop.f32.mrb[105].mxu0 }
 0x452   : > { %v4013_v14 = vadd.f32 %v3910_v45, %v6043_v52  ;;  %v4983_v60 = vpop.f32.mrb[106].mxu0 }
 0x453   : > { %4047 = vst [vmem:[%s6707_s24 + $0x50] sm:$0xff] %v4015_v48  ;;  %v4016_v59 = vadd.f32 %v4983_v60, %v6067_v44  ;;  %v3913_v5 = vpop.f32.mrb[107].mxu0  ;;  %v6878_v48 = vld [vmem:[#allocation25_spill] sm:$0xff] }
 0x454   : > { %4045 = vst [vmem:[%s6707_s24 + $0x40] sm:$0xff] %v4013_v14  ;;  %v4014_v26 = vadd.f32 %v3913_v5, %v6051_v4 }
 0x455   : > { %4048 = vst [vmem:[%s6707_s24 + $0x58] sm:$0xff] %v4016_v59 }
 0x456   : > { %4046 = vst [vmem:[%s6707_s24 + $0x48] sm:$0xff] %v4014_v26 }
 0x458   : > { %v4986_v35 = vpop.f32.mrb[108].mxu0 }
 0x459   : > { %v4019_v25 = vadd.f32 %v4986_v35, %v6092_v8  ;;  %v3926_v40 = vpop.f32.mrb[109].mxu0 }
 0x45a   : > { %v4017_v52 = vadd.f32 %v3926_v40, %v6860_v10  ;;  %v4987_v19 = vpop.f32.mrb[110].mxu0 }
 0x45b   : > { %4051 = vst [vmem:[%s6707_s24 + $0x70] sm:$0xff] %v4019_v25  ;;  %v4020_v44 = vadd.f32 %v4987_v19, %v6861_v0  ;;  %v3929_v31 = vpop.f32.mrb[111].mxu0 }
 0x45c   : > { %4049 = vst [vmem:[%s6707_s24 + $0x60] sm:$0xff] %v4017_v52  ;;  %v4018_v4 = vadd.f32 %v3929_v31, %v6862_v1 }
 0x45d   : > { %4052 = vst [vmem:[%s6707_s24 + $0x78] sm:$0xff] %v4020_v44 }
 0x45e   : > { %4050 = vst [vmem:[%s6707_s24 + $0x68] sm:$0xff] %v4018_v4 }
 0x460   : > { %v4990_v41 = vpop.f32.mrb[112].mxu0 }
 0x461   : > { %v4023_v8 = vadd.f32 %v4990_v41, %v6863_v34  ;;  %v3942_v12 = vpop.f32.mrb[113].mxu0 }
 0x462   : > { %v4021_v53 = vadd.f32 %v3942_v12, %v6864_v9  ;;  %v4991_v16 = vpop.f32.mrb[114].mxu0 }
 0x463   : > { %4055 = vst [vmem:[%s6707_s24 + $0x90] sm:$0xff] %v4023_v8  ;;  %v4024_v29 = vadd.f32 %v4991_v16, %v6865_v21  ;;  %v3945_v27 = vpop.f32.mrb[115].mxu0 }
 0x464   : > { %4053 = vst [vmem:[%s6707_s24 + $0x80] sm:$0xff] %v4021_v53  ;;  %v4022_v32 = vadd.f32 %v3945_v27, %v6866_v43 }
 0x465   : > { %4056 = vst [vmem:[%s6707_s24 + $0x98] sm:$0xff] %v4024_v29 }
 0x466   : > { %4054 = vst [vmem:[%s6707_s24 + $0x88] sm:$0xff] %v4022_v32 }
 0x468   : > { %v4994_v62 = vpop.f32.mrb[116].mxu0 }
 0x469   : > { %v4027_v57 = vadd.f32 %v4994_v62, %v6867_v37  ;;  %v3958_v56 = vpop.f32.mrb[117].mxu0 }
 0x46a   : > { %v4025_v24 = vadd.f32 %v3958_v56, %v6868_v61  ;;  %v4995_v30 = vpop.f32.mrb[118].mxu0 }
 0x46b   : > { %4059 = vst [vmem:[%s6707_s24 + $0xb0] sm:$0xff] %v4027_v57  ;;  %v4028_v7 = vadd.f32 %v4995_v30, %v6869_v13  ;;  %v3961_v42 = vpop.f32.mrb[119].mxu0 }
 0x46c   : > { %4057 = vst [vmem:[%s6707_s24 + $0xa0] sm:$0xff] %v4025_v24  ;;  %v4026_v50 = vadd.f32 %v3961_v42, %v6870_v15 }
 0x46d   : > { %4060 = vst [vmem:[%s6707_s24 + $0xb8] sm:$0xff] %v4028_v7 }
 0x46e   : > { %4058 = vst [vmem:[%s6707_s24 + $0xa8] sm:$0xff] %v4026_v50 }
 0x470   : > { %v4998_v18 = vpop.f32.mrb[120].mxu0 }
 0x471   : > { %v4031_v20 = vadd.f32 %v4998_v18, %v6871_v3  ;;  %v3974_v58 = vpop.f32.mrb[121].mxu0 }
 0x472   : > { %v4029_v55 = vadd.f32 %v3974_v58, %v6872_v46  ;;  %v4999_v23 = vpop.f32.mrb[122].mxu0 }
 0x473   : > { %4063 = vst [vmem:[%s6707_s24 + $0xd0] sm:$0xff] %v4031_v20  ;;  %v4032_v39 = vadd.f32 %v4999_v23, %v6873_v63  ;;  %v3977_v38 = vpop.f32.mrb[123].mxu0 }
 0x474   : > { %4061 = vst [vmem:[%s6707_s24 + $0xc0] sm:$0xff] %v4029_v55  ;;  %v4030_v28 = vadd.f32 %v3977_v38, %v6874_v33 }
 0x475   : > { %4064 = vst [vmem:[%s6707_s24 + $0xd8] sm:$0xff] %v4032_v39 }
 0x476   : > { %4062 = vst [vmem:[%s6707_s24 + $0xc8] sm:$0xff] %v4030_v28 }
 0x478   : > { %v5002_v36 = vpop.f32.mrb[124].mxu0 }
 0x479   : > { %v4035_v11 = vadd.f32 %v5002_v36, %v6875_v17  ;;  %v3990_v51 = vpop.f32.mrb[125].mxu0 }
 0x47a   : > { %v4033_v47 = vadd.f32 %v3990_v51, %v6876_v2  ;;  %v5003_v49 = vpop.f32.mrb[126].mxu0 }
 0x47b   : > { %4067 = vst [vmem:[%s6707_s24 + $0xf0] sm:$0xff] %v4035_v11  ;;  %v4036_v22 = vadd.f32 %v5003_v49, %v6877_v6  ;;  %v3993_v54 = vpop.f32.mrb[127].mxu0 }
 0x47c   : > { %4065 = vst [vmem:[%s6707_s24 + $0xe0] sm:$0xff] %v4033_v47  ;;  %v4034_v45 = vadd.f32 %v3993_v54, %v6878_v48 }
 0x47d   : > { %4068 = vst [vmem:[%s6707_s24 + $0xf8] sm:$0xff] %v4036_v22 }
 0x47e   : > { %4066 = vst [vmem:[%s6707_s24 + $0xe8] sm:$0xff] %v4034_v45 }
 0x47f   : > { %5383 = shalt.err (!%p5380_p9)
}
 0x480   : > { %s5384_s24 = scalar_lea.hbm %s6775_s16, 4096  ;;  %s5388_s14 = scalar_lea.hbm %s6834_s9, 8192 }
 0x481   : > { %p5385_p10 = scmp.ne.s32.totalorder %s6775_s16, %s5384_s24  ;;  %p5389_p13 = scmp.lt.u32.totalorder %s6775_s16, %s6834_s9 }
 0x482   : > { %p5390_p0 = scmp.lt.u32.totalorder %s5388_s14, %s5384_s24  ;;  %p5392_p2 = scmp.lt.u32.totalorder %s5384_s24, %s6775_s16 }
 0x483   : > { %p5386_p11 = pnand %p5385_p10, %p5532_p5 }
 0x484   : > { %p5391_p1 = por %p5390_p0, %p5389_p13 }
 0x485   : > { %p5387_p12 = pneg %p5386_p11 }
 0x486   : > { %p5393_p3 = por %p5392_p2, %p5391_p1 }
 0x488   : > { %p5394_p4 = pnand %p5393_p3, %p5387_p12 }
 0x48a   : > { %5397 = shalt.err (!%p5394_p4)
}
 0x48b   : > { %s6880_s23 = smov 128  }
 0x48c   : > { %5261 = dma.vmem_to_hbm [thread:$0]  (%p5532_p5), %s6777_s17, 4096, %s6775_s16, %s4075_s27, %s6880_s23, %s6880_s23, %s5442_s26  }
 0x48d PF: > { %p5271_p7 = scmp.ge.s32.totalorder %s5436_s12, 2  ;;  %s4119_s28 = sand.u32 1, %s5424_s30  }
 0x48e   : > { %s4120_s24 = scalar_lea.sflag [#allocation4], %s4119_s28 }
 0x48f   : > { %p5265_p8 = pnand %p5271_p7, %p5536_p6 }
 0x491   : > { %5415 = dma.done.wait (!%p5265_p8), %s4120_s24, 4096  }
 0x492   : > { %5417 = vsyncadd (!%p5265_p8), %s4120_s24, 4294963200  ;;  %s4129_s19 = scalar_lea.sflag [#allocation6], %s4119_s28 }
 0x493   : > { %5419 = dma.done.wait (!%p5265_p8), %s4129_s19, 4096  }
 0x494   : > { %5421 = vsyncadd (!%p5265_p8), %s4129_s19, 4294963200  ;;  %p23_p5 = scmp.ge.s32.totalorder %s5519_s15, 4   ;;  %s6881_s30 = smov %s5428_s10 }
 0x495   : > { %s6882_s10 = smov %s5432_s11  ;;  %s6883_s11 = smov %s5530_s18 }
 0x496   : > { %s6884_s12 = smov %s5519_s15  ;;  %25 = sbr.rel (!%p23_p5) target bundleno = 5 (0x5), region = 114 }
 0x49d   :  { %4134 = vsyncpa [#allocation4], 1 }
 0x49e   :  { %4136 = vsyncpa [#allocation4 + $0x1], 1 }
 0x49f   :  { %4137 = vsyncpa [#allocation6], 1 }
 0x4a0   :  { %4139 = vsyncpa [#allocation6 + $0x1], 1 }

</bundles_post_ra>
